<compile_context>
chip_gen: v7x
topology: tpu7x:2x2x1
jax: 0.10.0
libtpu: 0.0.40
codegen_flags: <defaults>
</compile_context>

<pallas_src>
import functools

import numpy as np
import jax
import jax.numpy as jnp
from jax.experimental import pallas as pl
from jax.experimental.pallas import tpu as pltpu


# ----------------------------------------------------------------------------
# The single fused kernel
# ----------------------------------------------------------------------------
def _fused_forward_kernel(p1_ref, w1_ref, b1_ref,
                          sel_ref, w2t_ref, b2_ref,
                          wmx_ref, wvx_ref, wdn1x_ref,
                          bm_ref, bv_ref,
                          a_ref, bco_ref, tn_ref, eps_ref,
                          wdn1n_ref, wdnt_ref, bdn1_ref,
                          wdn2_ref, bdn2_ref,
                          wd1_ref, bd1_ref,
                          wslab_ref, bslab_ref,
                          o_ref):
    f32, bf16 = jnp.float32, jnp.bfloat16

    # static sizes derived from ref shapes
    M1pad = sel_ref.shape[1]                 # padded conv1-pooled rows (B*Hp1*Wp1)
    n_off = p1_ref.shape[0] // M1pad         # pool*pool
    n_tap = w2t_ref.shape[0]                 # k*k
    nrow = sel_ref.shape[0] // n_tap         # rows per tap = n_off*n_s*Bpad
    blk = nrow // n_off                      # rows per pool offset = n_s*Bpad
    n_s = wmx_ref.shape[0]                   # conv2-pooled spatial cells
    Bpad = blk // n_s                        # padded batch rows

    # ---- conv1 + bias + ReLU as ONE GEMM on the pool-offset-stacked LHS,
    #      maxpool over offsets via aligned sublane-block max ----------------
    acc1 = jnp.dot(p1_ref[...], w1_ref[...], preferred_element_type=f32)
    acc1 = jnp.maximum(acc1 + b1_ref[...], 0.0)
    pooled1 = acc1[0:M1pad]
    for off in range(1, n_off):
        pooled1 = jnp.maximum(pooled1, acc1[off * M1pad:(off + 1) * M1pad])

    # ---- conv2: im2col done in-kernel as a 0/1 row-selection GEMM on the
    #      VMEM-resident conv1 output, then one tiny GEMM per conv tap -------
    g = jnp.dot(sel_ref[...], pooled1.astype(bf16), preferred_element_type=f32)
    g = g.astype(bf16)
    acc2 = jnp.dot(g[0:nrow], w2t_ref[0], preferred_element_type=f32)
    for tap in range(1, n_tap):
        acc2 = acc2 + jnp.dot(g[tap * nrow:(tap + 1) * nrow], w2t_ref[tap],
                              preferred_element_type=f32)
    acc2 = jnp.maximum(acc2 + b2_ref[...], 0.0)
    out2 = acc2[0:blk]
    for off in range(1, n_off):
        out2 = jnp.maximum(out2, acc2[off * blk:(off + 1) * blk])
    # out2: (n_s*Bpad, C2) f32, rows = s*Bpad + b, cols = conv2 channels

    # ---- flatten folded into the weights: x never materializes; each dense
    #      consumer of x is a sum of per-spatial-cell (Bpad,C2) GEMMs --------
    xs = [out2[s * Bpad:(s + 1) * Bpad].astype(bf16) for s in range(n_s)]

    def xproj(w_ref):
        acc = jnp.dot(xs[0], w_ref[0], preferred_element_type=f32)
        for s in range(1, n_s):
            acc = acc + jnp.dot(xs[s], w_ref[s], preferred_element_type=f32)
        return acc

    mean = xproj(wmx_ref) + bm_ref[...]
    logvar = xproj(wvx_ref) + bv_ref[...]
    x_dn = xproj(wdn1x_ref)                      # x @ dn_w1[:F]  (bias added later)

    # ---- VAE reparameterize (exp on the EUP, epilogue math stays f32) ------
    noise = mean + jnp.exp(0.5 * logvar) * eps_ref[...]
    noise_b = noise.astype(bf16)

    # ---- denoise MLP; diffusion FMA pushed through layer-1 by linearity,
    #      time fed as a rank-1 f32 update (no K=F+1 concat) -----------------
    n_dn = jnp.dot(noise_b, wdn1n_ref[...], preferred_element_type=f32)
    h1 = (a_ref[...] * x_dn + bco_ref[...] * n_dn
          + tn_ref[...] * wdnt_ref[...] + bdn1_ref[...])
    h1 = jnp.maximum(h1, 0.0)
    pred = (jnp.dot(h1.astype(bf16), wdn2_ref[...], preferred_element_type=f32)
            + bdn2_ref[...])
    pred_b = pred.astype(bf16)

    # ---- both gradient-reversal discriminators' first layers as one GEMM ---
    dh = jnp.maximum(
        jnp.dot(pred_b, wd1_ref[...], preferred_element_type=f32) + bd1_ref[...],
        0.0)

    # ---- lane-dense output slab: ONE stacked placement GEMM + one unmasked
    #      full-width (Bpad,128) store ---------------------------------------
    z = jnp.concatenate([noise, pred, dh], axis=1).astype(bf16)   # (Bpad, 96)
    o_ref[...] = (jnp.dot(z, wslab_ref[...], preferred_element_type=f32)
                  + bslab_ref[...])


_COMPILER_PARAMS = pltpu.CompilerParams(dimension_semantics=("arbitrary",))


def fused_forward(p1, a, bco, tn, eps, kp):
    """Single pallas_call for the entire DiffusionModel forward -> (Bpad,128)."""
    Bpad = a.shape[0]
    slab_w = kp["b_slab"].shape[1]
    args = (p1, kp["conv1_w"], kp["conv1_b"],
            kp["sel2"], kp["conv2_w_taps"], kp["conv2_b"],
            kp["enc_mean_wx"], kp["enc_var_wx"], kp["dn_w1_x"],
            kp["enc_mean_b"], kp["enc_var_b"],
            a, bco, tn, eps,
            kp["dn_w1_noise"], kp["dn_wt"], kp["dn_b1"],
            kp["dn_w2"], kp["dn_b2"],
            kp["disc_w1"], kp["disc_b1"],
            kp["w_slab"], kp["b_slab"])
    in_specs = [pl.BlockSpec(x.shape, lambda i, n=x.ndim: (0,) * n) for x in args]
    return pl.pallas_call(
        _fused_forward_kernel,
        out_shape=jax.ShapeDtypeStruct((Bpad, slab_w), jnp.float32),
        grid=(1,),
        in_specs=in_specs,
        out_specs=pl.BlockSpec((Bpad, slab_w), lambda i: (0, 0)),
        compiler_params=_COMPILER_PARAMS,
    )(*args)


# ----------------------------------------------------------------------------
# conv1 im2col patches, grouped by pooling offset (pure layout, done by XLA
# in one tiny fusion feeding the single pallas_call)
# ----------------------------------------------------------------------------
def make_pool_patches(x, k, pool, dtype=jnp.bfloat16):
    """x:(B,C,H,W) -> (pool*pool, B*Hp*Wp, C*k*k)."""
    B, C, H, W = x.shape
    Ho, Wo = H - k + 1, W - k + 1
    Hp, Wp = Ho // pool, Wo // pool
    cols = []
    for di in range(k):
        for dj in range(k):
            cols.append(x[:, :, di:di + Hp * pool, dj:dj + Wp * pool])
    p = jnp.stack(cols, axis=2)                        # (B,C,k*k,Hp*pool,Wp*pool)
    p = p.reshape(B, C, k * k, Hp, pool, Wp, pool)
    p = p.transpose(4, 6, 0, 3, 5, 1, 2)               # (pi,pj,B,Hp,Wp,C,k*k)
    p = p.reshape(pool * pool, B * Hp * Wp, C * k * k)
    return p.astype(dtype)


# ----------------------------------------------------------------------------
# Parameters
# ----------------------------------------------------------------------------
def init_params(key, cfg):
    """Raw PyTorch-layout parameters (f32), as in the reference module."""
    C_in, C1, C2 = cfg["conv1_in"], cfg["conv1_out"], cfg["conv2_out"]
    k = cfg["kernel"]
    F = cfg["in_features"]
    H = cfg["denoise_hidden"]
    Dh = cfg["disc_hidden"]
    nc = cfg["num_class"]

    def nrm(key, shape, scale=0.1):
        return scale * jax.random.normal(key, shape, dtype=jnp.float32)

    ks = jax.random.split(key, 24)
    return {
        "conv1_w": nrm(ks[0], (C1, C_in, k, k)),
        "conv1_b": nrm(ks[1], (C1,)),
        "conv2_w": nrm(ks[2], (C2, C1, k, k)),
        "conv2_b": nrm(ks[3], (C2,)),
        "enc_mean_w": nrm(ks[4], (F, F)),
        "enc_mean_b": nrm(ks[5], (F,)),
        "enc_var_w": nrm(ks[6], (F, F)),
        "enc_var_b": nrm(ks[7], (F,)),
        "cls_st_w": nrm(ks[8], (F, 2 * nc)),
        "cls_st_b": nrm(ks[9], (2 * nc,)),
        "cls_d_w": nrm(ks[10], (F, 2)),
        "cls_d_b": nrm(ks[11], (2,)),
        "dn_w1": nrm(ks[12], (F + 1, H)),
        "dn_b1": nrm(ks[13], (H,)),
        "dn_w2": nrm(ks[14], (H, F)),
        "dn_b2": nrm(ks[15], (F,)),
        "disc_st_w1": nrm(ks[16], (F, Dh)),
        "disc_st_b1": nrm(ks[17], (Dh,)),
        "disc_st_w2": nrm(ks[18], (Dh, 2 * nc)),
        "disc_st_b2": nrm(ks[19], (2 * nc,)),
        "disc_d_w1": nrm(ks[20], (F, Dh)),
        "disc_d_b1": nrm(ks[21], (Dh,)),
        "disc_d_w2": nrm(ks[22], (Dh, 2)),
        "disc_d_b2": nrm(ks[23], (2,)),
        "dns_w": nrm(jax.random.fold_in(key, 100), (F, nc)),
        "dns_b": nrm(jax.random.fold_in(key, 101), (nc,)),
    }


def _slab_layout(cfg):
    """Column offsets of each logical output inside the (B, slab_w) slab."""
    F, nc = cfg["in_features"], cfg["num_class"]
    w_heads = 2 * nc + 2
    col_nh = 0                     # [cls_st | cls_d]
    col_eps = col_nh + w_heads     # eps (noise) pass-through
    col_pred = col_eps + F         # pred_eps pass-through
    col_dh = col_pred + F          # [disc_st | disc_d]
    col_dns = col_dh + w_heads     # source classifier (all rows)
    total = col_dns + nc
    slab_w = ((total + 127) // 128) * 128
    return col_nh, col_eps, col_pred, col_dh, col_dns, slab_w


def _build_conv2_selection(B, Bpad, Hp1, Wp1, k, pool, Hp2, Wp2, M1pad):
    """0/1 row-selection matrix implementing conv2's im2col over the
    conv1-pooled output (rows = b*Hp1*Wp1 + h1*Wp1 + w1, padded to M1pad)."""
    n_s = Hp2 * Wp2
    nrow = (pool * pool) * n_s * Bpad
    sel = np.zeros((k * k * nrow, M1pad), np.float32)
    for di in range(k):
        for dj in range(k):
            tap = di * k + dj
            for pi in range(pool):
                for pj in range(pool):
                    off = pi * pool + pj
                    for hp2 in range(Hp2):
                        for wp2 in range(Wp2):
                            s = hp2 * Wp2 + wp2
                            for b in range(B):
                                h1 = hp2 * pool + pi + di
                                w1 = wp2 * pool + pj + dj
                                r = (b * Hp1 + h1) * Wp1 + w1
                                n = tap * nrow + (off * n_s + s) * Bpad + b
                                sel[n, r] = 1.0
    return jnp.asarray(sel, jnp.bfloat16)


def prepare_kernel_params(raw, cfg, batch_size):
    """One-time packing / casting of raw params into kernel-ready layout."""
    f32, bf16 = jnp.float32, jnp.bfloat16
    F, nc = cfg["in_features"], cfg["num_class"]
    Dh, H = cfg["disc_hidden"], cfg["denoise_hidden"]
    C1, C2 = cfg["conv1_out"], cfg["conv2_out"]
    k, pool, hw = cfg["kernel"], cfg["pool"], cfg["input_hw"]

    Hp1 = (hw - k + 1) // pool
    Wp1 = Hp1
    Hp2 = (Hp1 - k + 1) // pool
    Wp2 = Hp2
    n_s = Hp2 * Wp2
    assert F == C2 * n_s, "in_features must equal conv2_out * pooled spatial cells"

    B = batch_size
    Bpad = max(8, ((B + 7) // 8) * 8)
    M1 = B * Hp1 * Wp1
    M1pad = ((M1 + 7) // 8) * 8

    col_nh, col_eps, col_pred, col_dh, col_dns, slab_w = _slab_layout(cfg)

    def rowb(b):
        return b.reshape(1, -1).astype(f32)

    def conv_mat(w):                                    # (Co,Ci,k,k)->(Ci*k*k,Co)
        return w.reshape(w.shape[0], -1).T.astype(bf16)

    def xw(w):   # canonical (F,out) -> per-spatial (n_s, C2, out), flatten folded in
        return w.reshape(C2, n_s, w.shape[1]).transpose(1, 0, 2).astype(bf16)

    # diffusion schedule, precomputed once (matches torch.linspace / cumprod)
    betas = jnp.linspace(cfg["beta_1"], cfg["beta_t"], cfg["n_t"], dtype=f32)
    alphas_bar = jnp.cumprod(1.0 - betas)

    # stacked slab placement weight: rows = [noise(F) | pred_eps(F) | dh(2*Dh)]
    eye = jnp.eye(F, dtype=f32)
    W = jnp.zeros((2 * F + 2 * Dh, slab_w), f32)
    W = W.at[0:F, col_nh:col_nh + 2 * nc].set(raw["cls_st_w"])
    W = W.at[0:F, col_nh + 2 * nc:col_nh + 2 * nc + 2].set(raw["cls_d_w"])
    W = W.at[0:F, col_eps:col_eps + F].set(eye)
    W = W.at[F:2 * F, col_pred:col_pred + F].set(eye)
    W = W.at[F:2 * F, col_dns:col_dns + nc].set(raw["dns_w"])
    W = W.at[2 * F:2 * F + Dh, col_dh:col_dh + 2 * nc].set(raw["disc_st_w2"])
    W = W.at[2 * F + Dh:, col_dh + 2 * nc:col_dh + 2 * nc + 2].set(raw["disc_d_w2"])

    b_slab = jnp.zeros((1, slab_w), f32)
    b_slab = b_slab.at[0, col_nh:col_nh + 2 * nc].set(raw["cls_st_b"])
    b_slab = b_slab.at[0, col_nh + 2 * nc:col_nh + 2 * nc + 2].set(raw["cls_d_b"])
    b_slab = b_slab.at[0, col_dh:col_dh + 2 * nc].set(raw["disc_st_b2"])
    b_slab = b_slab.at[0, col_dh + 2 * nc:col_dh + 2 * nc + 2].set(raw["disc_d_b2"])
    b_slab = b_slab.at[0, col_dns:col_dns + nc].set(raw["dns_b"])

    return {
        # featurizer (bf16 MXU operands, f32 biases)
        "conv1_w": conv_mat(raw["conv1_w"]), "conv1_b": rowb(raw["conv1_b"]),
        "sel2": _build_conv2_selection(B, Bpad, Hp1, Wp1, k, pool, Hp2, Wp2, M1pad),
        "conv2_w_taps": raw["conv2_w"].transpose(2, 3, 1, 0)
                                       .reshape(k * k, C1, C2).astype(bf16),
        "conv2_b": rowb(raw["conv2_b"]),
        # noise encoder + denoise layer-1, with the flatten folded into the rows
        "enc_mean_wx": xw(raw["enc_mean_w"]), "enc_mean_b": rowb(raw["enc_mean_b"]),
        "enc_var_wx": xw(raw["enc_var_w"]), "enc_var_b": rowb(raw["enc_var_b"]),
        "dn_w1_x": xw(raw["dn_w1"][:F]),
        "dn_w1_noise": raw["dn_w1"][:F].astype(bf16),
        "dn_wt": raw["dn_w1"][F:F + 1].astype(f32),
        "dn_b1": rowb(raw["dn_b1"]),
        "dn_w2": raw["dn_w2"].astype(bf16), "dn_b2": rowb(raw["dn_b2"]),
        # both discriminator layer-1s fused into one (F, 2*Dh) GEMM
        "disc_w1": jnp.concatenate([raw["disc_st_w1"], raw["disc_d_w1"]],
                                   axis=1).astype(bf16),
        "disc_b1": jnp.concatenate([raw["disc_st_b1"], raw["disc_d_b1"]]
                                   ).reshape(1, -1).astype(f32),
        # stacked slab placement (single GEMM)
        "w_slab": W.astype(bf16),
        "b_slab": b_slab,
        # diffusion schedule
        "r_ab": jnp.sqrt(alphas_bar).astype(f32),
        "r_1m_ab": jnp.sqrt(1.0 - alphas_bar).astype(f32),
    }


# ----------------------------------------------------------------------------
# Forward pass (mirrors DiffusionModel.forward)
# ----------------------------------------------------------------------------
def diffusion_forward(kp, ST_x, S_x_index, t, reparam_eps, cfg):
    k, pool = cfg["kernel"], cfg["pool"]
    nc, F = cfg["num_class"], cfg["in_features"]
    B = ST_x.shape[0]
    Bpad = max(8, ((B + 7) // 8) * 8)

    # conv1 im2col (layout only) -> (n_off*M1pad, Cin*k*k), one XLA fusion
    p1 = make_pool_patches(ST_x, k, pool)
    n_off, M1, K1 = p1.shape
    M1pad = ((M1 + 7) // 8) * 8
    assert kp["sel2"].shape[1] == M1pad, "batch/spatial size mismatch vs. prepared params"
    p1 = jnp.pad(p1, ((0, 0), (0, M1pad - M1), (0, 0))).reshape(n_off * M1pad, K1)

    # per-sample diffusion scalars (schedule precomputed at init), padded rows
    tm1 = t[:, 0] - 1
    a = jnp.zeros((Bpad, 1), jnp.float32).at[:B, 0].set(kp["r_ab"][tm1])
    bco = jnp.zeros((Bpad, 1), jnp.float32).at[:B, 0].set(kp["r_1m_ab"][tm1])
    tn = jnp.zeros((Bpad, 1), jnp.float32).at[:B, 0].set(
        t[:, 0].astype(jnp.float32) / float(cfg["n_t"]))
    eps_in = jnp.zeros((Bpad, F), jnp.float32).at[:B].set(reparam_eps)

    # the entire network: one fused Pallas kernel -> lane-dense (Bpad,128) slab
    slab = fused_forward(p1, a, bco, tn, eps_in, kp)

    col_nh, col_eps, col_pred, col_dh, col_dns, _ = _slab_layout(cfg)
    sb = slab[:B]
    add_noise_classify_st = sb[:, col_nh:col_nh + 2 * nc]
    add_noise_classify_d = sb[:, col_nh + 2 * nc:col_nh + 2 * nc + 2]
    eps_out = sb[:, col_eps:col_eps + F]
    pred_eps = sb[:, col_pred:col_pred + F]
    denoise_classify_st_reverse = sb[:, col_dh:col_dh + 2 * nc]
    denoise_classify_d_reverse = sb[:, col_dh + 2 * nc:col_dh + 2 * nc + 2]
    denoise_classify_s = sb[:, col_dns:col_dns + nc][S_x_index]

    return (add_noise_classify_st, add_noise_classify_d, eps_out, pred_eps,
            denoise_classify_st_reverse, denoise_classify_d_reverse,
            denoise_classify_s)


# ----------------------------------------------------------------------------
# Pure-JAX f32 reference (for correctness check of the fused kernel)
# ----------------------------------------------------------------------------
def reference_forward(raw, ST_x, S_x_index, t, reparam_eps, cfg):
    def conv2d(x, w, b):
        out = jax.lax.conv_general_dilated(
            x, w, (1, 1), "VALID",
            dimension_numbers=("NCHW", "OIHW", "NCHW"))
        return out + b.reshape(1, -1, 1, 1)

    def pool(x, p):
        B, C, H, W = x.shape
        Hp, Wp = H // p, W // p
        return x[:, :, :Hp * p, :Wp * p].reshape(B, C, Hp, p, Wp, p).max(axis=(3, 5))

    h = pool(jnp.maximum(conv2d(ST_x, raw["conv1_w"], raw["conv1_b"]), 0.0), cfg["pool"])
    h = pool(jnp.maximum(conv2d(h, raw["conv2_w"], raw["conv2_b"]), 0.0), cfg["pool"])
    x1 = h.reshape(h.shape[0], -1)

    mean = x1 @ raw["enc_mean_w"] + raw["enc_mean_b"]
    logv = x1 @ raw["enc_var_w"] + raw["enc_var_b"]
    noise = mean + jnp.exp(0.5 * logv) * reparam_eps
    cls_st = noise @ raw["cls_st_w"] + raw["cls_st_b"]
    cls_d = noise @ raw["cls_d_w"] + raw["cls_d_b"]

    betas = jnp.linspace(cfg["beta_1"], cfg["beta_t"], cfg["n_t"], dtype=jnp.float32)
    ab = jnp.cumprod(1.0 - betas)
    tm1 = t[:, 0] - 1
    diffused = jnp.sqrt(ab)[tm1][:, None] * x1 + jnp.sqrt(1.0 - ab)[tm1][:, None] * noise

    dn_in = jnp.concatenate([diffused, t.astype(jnp.float32) / cfg["n_t"]], axis=1)
    h1 = jnp.maximum(dn_in @ raw["dn_w1"] + raw["dn_b1"], 0.0)
    pred = h1 @ raw["dn_w2"] + raw["dn_b2"]

    d1 = jnp.maximum(pred @ raw["disc_st_w1"] + raw["disc_st_b1"], 0.0)
    st_rev = d1 @ raw["disc_st_w2"] + raw["disc_st_b2"]
    d2 = jnp.maximum(pred @ raw["disc_d_w1"] + raw["disc_d_b1"], 0.0)
    d_rev = d2 @ raw["disc_d_w2"] + raw["disc_d_b2"]
    dns = pred[S_x_index] @ raw["dns_w"] + raw["dns_b"]
    return (cls_st, cls_d, noise, pred, st_rev, d_rev, dns)


# ----------------------------------------------------------------------------
# Demo
# ----------------------------------------------------------------------------
if __name__ == "__main__":
    cfg = dict(
        n_t=10, beta_1=1e-4, beta_t=0.02,
        conv1_in=4, conv1_out=8, conv2_out=8, kernel=3, pool=2,
        denoise_hidden=32, in_features=32, num_class=3, disc_hidden=16,
        reverse_alpha=1.0, input_hw=16,
    )
    # spatial check: 16 -conv3-> 14 -pool2-> 7 -conv3-> 5 -pool2-> 2 ; 8*2*2 = 32

    key = jax.random.PRNGKey(0)
    k_param, k_x, k_t, k_eps = jax.random.split(key, 4)

    raw_params = init_params(k_param, cfg)

    B = 2
    kernel_params = prepare_kernel_params(raw_params, cfg, batch_size=B)

    ST_x = jax.random.normal(
        k_x, (B, cfg["conv1_in"], cfg["input_hw"], cfg["input_hw"]), dtype=jnp.float32)
    S_x_index = jnp.array([0], dtype=jnp.int32)
    # randomness of torch.randint / torch.randn_like drawn deterministically here
    t = jax.random.randint(k_t, (B, 1), 1, cfg["n_t"] + 1)
    reparam_eps = jax.random.normal(k_eps, (B, cfg["in_features"]), dtype=jnp.float32)

    fwd = jax.jit(functools.partial(diffusion_forward, cfg=cfg))
    outs = jax.block_until_ready(fwd(kernel_params, ST_x, S_x_index, t, reparam_eps))

    expected_shapes = [
        (B, 2 * cfg["num_class"]),           # add_noise_classify_st
        (B, 2),                              # add_noise_classify_d
        (B, cfg["in_features"]),             # eps
        (B, cfg["in_features"]),             # pred_eps
        (B, 2 * cfg["num_class"]),           # denoise_classify_st_reverse
        (B, 2),                              # denoise_classify_d_reverse
        (len(S_x_index), cfg["num_class"]),  # denoise_classify_s
    ]
    for o, s in zip(outs, expected_shapes):
        assert o.shape == s, (o.shape, s)
        assert bool(jnp.all(jnp.isfinite(o)))

    # numerical check against a plain-JAX f32 reference (bf16-level tolerance)
    ref = jax.block_until_ready(
        jax.jit(functools.partial(reference_forward, cfg=cfg))(
            raw_params, ST_x, S_x_index, t, reparam_eps))
    for o, r in zip(outs, ref):
        assert bool(jnp.allclose(o, r, rtol=5e-2, atol=5e-2)), \
            float(jnp.max(jnp.abs(o - r)))

    print("KERNEL_OK")
</pallas_src>

<mosaic_0001>
module attributes {stable_mosaic.version = 11 : i64} {
  func.func @_fused_forward_kernel(%arg0: i32, %arg1: memref<416x36xbf16, #tpu.memory_space<vmem>>, %arg2: memref<36x8xbf16, #tpu.memory_space<vmem>>, %arg3: memref<1x8xf32, #tpu.memory_space<vmem>>, %arg4: memref<1152x104xbf16, #tpu.memory_space<vmem>>, %arg5: memref<9x8x8xbf16, #tpu.memory_space<vmem>>, %arg6: memref<1x8xf32, #tpu.memory_space<vmem>>, %arg7: memref<4x8x32xbf16, #tpu.memory_space<vmem>>, %arg8: memref<4x8x32xbf16, #tpu.memory_space<vmem>>, %arg9: memref<4x8x32xbf16, #tpu.memory_space<vmem>>, %arg10: memref<1x32xf32, #tpu.memory_space<vmem>>, %arg11: memref<1x32xf32, #tpu.memory_space<vmem>>, %arg12: memref<8x1xf32, #tpu.memory_space<vmem>>, %arg13: memref<8x1xf32, #tpu.memory_space<vmem>>, %arg14: memref<8x1xf32, #tpu.memory_space<vmem>>, %arg15: memref<8x32xf32, #tpu.memory_space<vmem>>, %arg16: memref<32x32xbf16, #tpu.memory_space<vmem>>, %arg17: memref<1x32xf32, #tpu.memory_space<vmem>>, %arg18: memref<1x32xf32, #tpu.memory_space<vmem>>, %arg19: memref<32x32xbf16, #tpu.memory_space<vmem>>, %arg20: memref<1x32xf32, #tpu.memory_space<vmem>>, %arg21: memref<32x32xbf16, #tpu.memory_space<vmem>>, %arg22: memref<1x32xf32, #tpu.memory_space<vmem>>, %arg23: memref<96x128xbf16, #tpu.memory_space<vmem>>, %arg24: memref<1x128xf32, #tpu.memory_space<vmem>>, %arg25: memref<8x128xf32, #tpu.memory_space<vmem>>) attributes {dimension_semantics = [#tpu.dimension_semantics<arbitrary>], iteration_bounds = array<i64: 1>, scalar_prefetch = 0 : i64, scratch_operands = 0 : i64, tpu.core_type = #tpu.core_type<tc>, window_params = [{pipeline_mode = #tpu.pipeline_mode<synchronous>, transform_indices = @transform_0, window_bounds = array<i64: 416, 36>}, {pipeline_mode = #tpu.pipeline_mode<synchronous>, transform_indices = @transform_1, window_bounds = array<i64: 36, 8>}, {pipeline_mode = #tpu.pipeline_mode<synchronous>, transform_indices = @transform_2, window_bounds = array<i64: 1, 8>}, {pipeline_mode = #tpu.pipeline_mode<synchronous>, transform_indices = @transform_3, window_bounds = array<i64: 1152, 104>}, {pipeline_mode = #tpu.pipeline_mode<synchronous>, transform_indices = @transform_4, window_bounds = array<i64: 9, 8, 8>}, {pipeline_mode = #tpu.pipeline_mode<synchronous>, transform_indices = @transform_5, window_bounds = array<i64: 1, 8>}, {pipeline_mode = #tpu.pipeline_mode<synchronous>, transform_indices = @transform_6, window_bounds = array<i64: 4, 8, 32>}, {pipeline_mode = #tpu.pipeline_mode<synchronous>, transform_indices = @transform_7, window_bounds = array<i64: 4, 8, 32>}, {pipeline_mode = #tpu.pipeline_mode<synchronous>, transform_indices = @transform_8, window_bounds = array<i64: 4, 8, 32>}, {pipeline_mode = #tpu.pipeline_mode<synchronous>, transform_indices = @transform_9, window_bounds = array<i64: 1, 32>}, {pipeline_mode = #tpu.pipeline_mode<synchronous>, transform_indices = @transform_10, window_bounds = array<i64: 1, 32>}, {pipeline_mode = #tpu.pipeline_mode<synchronous>, transform_indices = @transform_11, window_bounds = array<i64: 8, 1>}, {pipeline_mode = #tpu.pipeline_mode<synchronous>, transform_indices = @transform_12, window_bounds = array<i64: 8, 1>}, {pipeline_mode = #tpu.pipeline_mode<synchronous>, transform_indices = @transform_13, window_bounds = array<i64: 8, 1>}, {pipeline_mode = #tpu.pipeline_mode<synchronous>, transform_indices = @transform_14, window_bounds = array<i64: 8, 32>}, {pipeline_mode = #tpu.pipeline_mode<synchronous>, transform_indices = @transform_15, window_bounds = array<i64: 32, 32>}, {pipeline_mode = #tpu.pipeline_mode<synchronous>, transform_indices = @transform_16, window_bounds = array<i64: 1, 32>}, {pipeline_mode = #tpu.pipeline_mode<synchronous>, transform_indices = @transform_17, window_bounds = array<i64: 1, 32>}, {pipeline_mode = #tpu.pipeline_mode<synchronous>, transform_indices = @transform_18, window_bounds = array<i64: 32, 32>}, {pipeline_mode = #tpu.pipeline_mode<synchronous>, transform_indices = @transform_19, window_bounds = array<i64: 1, 32>}, {pipeline_mode = #tpu.pipeline_mode<synchronous>, transform_indices = @transform_20, window_bounds = array<i64: 32, 32>}, {pipeline_mode = #tpu.pipeline_mode<synchronous>, transform_indices = @transform_21, window_bounds = array<i64: 1, 32>}, {pipeline_mode = #tpu.pipeline_mode<synchronous>, transform_indices = @transform_22, window_bounds = array<i64: 96, 128>}, {pipeline_mode = #tpu.pipeline_mode<synchronous>, transform_indices = @transform_23, window_bounds = array<i64: 1, 128>}, {pipeline_mode = #tpu.pipeline_mode<synchronous>, transform_indices = @transform_24, window_bounds = array<i64: 8, 128>}]} {
    %c0 = arith.constant 0 : index
    %c0_0 = arith.constant 0 : index
    %0 = vector.load %arg1[%c0, %c0_0] : memref<416x36xbf16, #tpu.memory_space<vmem>>, vector<416x36xbf16>
    %c0_1 = arith.constant 0 : index
    %c0_2 = arith.constant 0 : index
    %1 = vector.load %arg2[%c0_1, %c0_2] : memref<36x8xbf16, #tpu.memory_space<vmem>>, vector<36x8xbf16>
    %cst = arith.constant dense<0.000000e+00> : vector<416x8xf32>
    %2 = tpu.matmul %0, %1, %cst {dimension_numbers = #tpu.dot_dimension_numbers<[1], [0], [0], [1], [0, 0, 1, 1], [], []>} : vector<416x36xbf16>, vector<36x8xbf16>, vector<416x8xf32> -> vector<416x8xf32>
    %c0_3 = arith.constant 0 : index
    %c0_4 = arith.constant 0 : index
    %3 = vector.load %arg3[%c0_3, %c0_4] : memref<1x8xf32, #tpu.memory_space<vmem>>, vector<1x8xf32>
    %4 = vector.broadcast %3 : vector<1x8xf32> to vector<416x8xf32>
    %5 = arith.addf %2, %4 : vector<416x8xf32>
    %cst_5 = arith.constant 0.000000e+00 : f32
    %6 = vector.broadcast %cst_5 : f32 to vector<416x8xf32>
    %7 = arith.maximumf %5, %6 : vector<416x8xf32>
    %8 = vector.extract_strided_slice %7 {offsets = [0, 0], sizes = [104, 8], strides = [1, 1]} : vector<416x8xf32> to vector<104x8xf32>
    %9 = vector.extract_strided_slice %7 {offsets = [104, 0], sizes = [104, 8], strides = [1, 1]} : vector<416x8xf32> to vector<104x8xf32>
    %10 = arith.maximumf %8, %9 : vector<104x8xf32>
    %11 = vector.extract_strided_slice %7 {offsets = [208, 0], sizes = [104, 8], strides = [1, 1]} : vector<416x8xf32> to vector<104x8xf32>
    %12 = arith.maximumf %10, %11 : vector<104x8xf32>
    %13 = vector.extract_strided_slice %7 {offsets = [312, 0], sizes = [104, 8], strides = [1, 1]} : vector<416x8xf32> to vector<104x8xf32>
    %14 = arith.maximumf %12, %13 : vector<104x8xf32>
    %c0_6 = arith.constant 0 : index
    %c0_7 = arith.constant 0 : index
    %15 = vector.load %arg4[%c0_6, %c0_7] : memref<1152x104xbf16, #tpu.memory_space<vmem>>, vector<1152x104xbf16>
    %16 = arith.truncf %14 : vector<104x8xf32> to vector<104x8xbf16>
    %cst_8 = arith.constant dense<0.000000e+00> : vector<1152x8xf32>
    %17 = tpu.matmul %15, %16, %cst_8 {dimension_numbers = #tpu.dot_dimension_numbers<[1], [0], [0], [1], [0, 0, 1, 1], [], []>} : vector<1152x104xbf16>, vector<104x8xbf16>, vector<1152x8xf32> -> vector<1152x8xf32>
    %18 = arith.truncf %17 : vector<1152x8xf32> to vector<1152x8xbf16>
    %19 = vector.extract_strided_slice %18 {offsets = [0, 0], sizes = [128, 8], strides = [1, 1]} : vector<1152x8xbf16> to vector<128x8xbf16>
    %c0_9 = arith.constant 0 : index
    %c0_10 = arith.constant 0 : index
    %c0_11 = arith.constant 0 : index
    %20 = vector.load %arg5[%c0_9, %c0_10, %c0_11] : memref<9x8x8xbf16, #tpu.memory_space<vmem>>, vector<1x8x8xbf16>
    %21 = vector.shape_cast %20 : vector<1x8x8xbf16> to vector<8x8xbf16>
    %cst_12 = arith.constant dense<0.000000e+00> : vector<128x8xf32>
    %22 = tpu.matmul %19, %21, %cst_12 {dimension_numbers = #tpu.dot_dimension_numbers<[1], [0], [0], [1], [0, 0, 1, 1], [], []>} : vector<128x8xbf16>, vector<8x8xbf16>, vector<128x8xf32> -> vector<128x8xf32>
    %23 = vector.extract_strided_slice %18 {offsets = [128, 0], sizes = [128, 8], strides = [1, 1]} : vector<1152x8xbf16> to vector<128x8xbf16>
    %c1 = arith.constant 1 : index
    %c0_13 = arith.constant 0 : index
    %c0_14 = arith.constant 0 : index
    %24 = vector.load %arg5[%c1, %c0_13, %c0_14] : memref<9x8x8xbf16, #tpu.memory_space<vmem>>, vector<1x8x8xbf16>
    %25 = vector.shape_cast %24 : vector<1x8x8xbf16> to vector<8x8xbf16>
    %cst_15 = arith.constant dense<0.000000e+00> : vector<128x8xf32>
    %26 = tpu.matmul %23, %25, %cst_15 {dimension_numbers = #tpu.dot_dimension_numbers<[1], [0], [0], [1], [0, 0, 1, 1], [], []>} : vector<128x8xbf16>, vector<8x8xbf16>, vector<128x8xf32> -> vector<128x8xf32>
    %27 = arith.addf %22, %26 : vector<128x8xf32>
    %28 = vector.extract_strided_slice %18 {offsets = [256, 0], sizes = [128, 8], strides = [1, 1]} : vector<1152x8xbf16> to vector<128x8xbf16>
    %c2 = arith.constant 2 : index
    %c0_16 = arith.constant 0 : index
    %c0_17 = arith.constant 0 : index
    %29 = vector.load %arg5[%c2, %c0_16, %c0_17] : memref<9x8x8xbf16, #tpu.memory_space<vmem>>, vector<1x8x8xbf16>
    %30 = vector.shape_cast %29 : vector<1x8x8xbf16> to vector<8x8xbf16>
    %cst_18 = arith.constant dense<0.000000e+00> : vector<128x8xf32>
    %31 = tpu.matmul %28, %30, %cst_18 {dimension_numbers = #tpu.dot_dimension_numbers<[1], [0], [0], [1], [0, 0, 1, 1], [], []>} : vector<128x8xbf16>, vector<8x8xbf16>, vector<128x8xf32> -> vector<128x8xf32>
    %32 = arith.addf %27, %31 : vector<128x8xf32>
    %33 = vector.extract_strided_slice %18 {offsets = [384, 0], sizes = [128, 8], strides = [1, 1]} : vector<1152x8xbf16> to vector<128x8xbf16>
    %c3 = arith.constant 3 : index
    %c0_19 = arith.constant 0 : index
    %c0_20 = arith.constant 0 : index
    %34 = vector.load %arg5[%c3, %c0_19, %c0_20] : memref<9x8x8xbf16, #tpu.memory_space<vmem>>, vector<1x8x8xbf16>
    %35 = vector.shape_cast %34 : vector<1x8x8xbf16> to vector<8x8xbf16>
    %cst_21 = arith.constant dense<0.000000e+00> : vector<128x8xf32>
    %36 = tpu.matmul %33, %35, %cst_21 {dimension_numbers = #tpu.dot_dimension_numbers<[1], [0], [0], [1], [0, 0, 1, 1], [], []>} : vector<128x8xbf16>, vector<8x8xbf16>, vector<128x8xf32> -> vector<128x8xf32>
    %37 = arith.addf %32, %36 : vector<128x8xf32>
    %38 = vector.extract_strided_slice %18 {offsets = [512, 0], sizes = [128, 8], strides = [1, 1]} : vector<1152x8xbf16> to vector<128x8xbf16>
    %c4 = arith.constant 4 : index
    %c0_22 = arith.constant 0 : index
    %c0_23 = arith.constant 0 : index
    %39 = vector.load %arg5[%c4, %c0_22, %c0_23] : memref<9x8x8xbf16, #tpu.memory_space<vmem>>, vector<1x8x8xbf16>
    %40 = vector.shape_cast %39 : vector<1x8x8xbf16> to vector<8x8xbf16>
    %cst_24 = arith.constant dense<0.000000e+00> : vector<128x8xf32>
    %41 = tpu.matmul %38, %40, %cst_24 {dimension_numbers = #tpu.dot_dimension_numbers<[1], [0], [0], [1], [0, 0, 1, 1], [], []>} : vector<128x8xbf16>, vector<8x8xbf16>, vector<128x8xf32> -> vector<128x8xf32>
    %42 = arith.addf %37, %41 : vector<128x8xf32>
    %43 = vector.extract_strided_slice %18 {offsets = [640, 0], sizes = [128, 8], strides = [1, 1]} : vector<1152x8xbf16> to vector<128x8xbf16>
    %c5 = arith.constant 5 : index
    %c0_25 = arith.constant 0 : index
    %c0_26 = arith.constant 0 : index
    %44 = vector.load %arg5[%c5, %c0_25, %c0_26] : memref<9x8x8xbf16, #tpu.memory_space<vmem>>, vector<1x8x8xbf16>
    %45 = vector.shape_cast %44 : vector<1x8x8xbf16> to vector<8x8xbf16>
    %cst_27 = arith.constant dense<0.000000e+00> : vector<128x8xf32>
    %46 = tpu.matmul %43, %45, %cst_27 {dimension_numbers = #tpu.dot_dimension_numbers<[1], [0], [0], [1], [0, 0, 1, 1], [], []>} : vector<128x8xbf16>, vector<8x8xbf16>, vector<128x8xf32> -> vector<128x8xf32>
    %47 = arith.addf %42, %46 : vector<128x8xf32>
    %48 = vector.extract_strided_slice %18 {offsets = [768, 0], sizes = [128, 8], strides = [1, 1]} : vector<1152x8xbf16> to vector<128x8xbf16>
    %c6 = arith.constant 6 : index
    %c0_28 = arith.constant 0 : index
    %c0_29 = arith.constant 0 : index
    %49 = vector.load %arg5[%c6, %c0_28, %c0_29] : memref<9x8x8xbf16, #tpu.memory_space<vmem>>, vector<1x8x8xbf16>
    %50 = vector.shape_cast %49 : vector<1x8x8xbf16> to vector<8x8xbf16>
    %cst_30 = arith.constant dense<0.000000e+00> : vector<128x8xf32>
    %51 = tpu.matmul %48, %50, %cst_30 {dimension_numbers = #tpu.dot_dimension_numbers<[1], [0], [0], [1], [0, 0, 1, 1], [], []>} : vector<128x8xbf16>, vector<8x8xbf16>, vector<128x8xf32> -> vector<128x8xf32>
    %52 = arith.addf %47, %51 : vector<128x8xf32>
    %53 = vector.extract_strided_slice %18 {offsets = [896, 0], sizes = [128, 8], strides = [1, 1]} : vector<1152x8xbf16> to vector<128x8xbf16>
    %c7 = arith.constant 7 : index
    %c0_31 = arith.constant 0 : index
    %c0_32 = arith.constant 0 : index
    %54 = vector.load %arg5[%c7, %c0_31, %c0_32] : memref<9x8x8xbf16, #tpu.memory_space<vmem>>, vector<1x8x8xbf16>
    %55 = vector.shape_cast %54 : vector<1x8x8xbf16> to vector<8x8xbf16>
    %cst_33 = arith.constant dense<0.000000e+00> : vector<128x8xf32>
    %56 = tpu.matmul %53, %55, %cst_33 {dimension_numbers = #tpu.dot_dimension_numbers<[1], [0], [0], [1], [0, 0, 1, 1], [], []>} : vector<128x8xbf16>, vector<8x8xbf16>, vector<128x8xf32> -> vector<128x8xf32>
    %57 = arith.addf %52, %56 : vector<128x8xf32>
    %58 = vector.extract_strided_slice %18 {offsets = [1024, 0], sizes = [128, 8], strides = [1, 1]} : vector<1152x8xbf16> to vector<128x8xbf16>
    %c8 = arith.constant 8 : index
    %c0_34 = arith.constant 0 : index
    %c0_35 = arith.constant 0 : index
    %59 = vector.load %arg5[%c8, %c0_34, %c0_35] : memref<9x8x8xbf16, #tpu.memory_space<vmem>>, vector<1x8x8xbf16>
    %60 = vector.shape_cast %59 : vector<1x8x8xbf16> to vector<8x8xbf16>
    %cst_36 = arith.constant dense<0.000000e+00> : vector<128x8xf32>
    %61 = tpu.matmul %58, %60, %cst_36 {dimension_numbers = #tpu.dot_dimension_numbers<[1], [0], [0], [1], [0, 0, 1, 1], [], []>} : vector<128x8xbf16>, vector<8x8xbf16>, vector<128x8xf32> -> vector<128x8xf32>
    %62 = arith.addf %57, %61 : vector<128x8xf32>
    %c0_37 = arith.constant 0 : index
    %c0_38 = arith.constant 0 : index
    %63 = vector.load %arg6[%c0_37, %c0_38] : memref<1x8xf32, #tpu.memory_space<vmem>>, vector<1x8xf32>
    %64 = vector.broadcast %63 : vector<1x8xf32> to vector<128x8xf32>
    %65 = arith.addf %62, %64 : vector<128x8xf32>
    %cst_39 = arith.constant 0.000000e+00 : f32
    %66 = vector.broadcast %cst_39 : f32 to vector<128x8xf32>
    %67 = arith.maximumf %65, %66 : vector<128x8xf32>
    %68 = vector.extract_strided_slice %67 {offsets = [0, 0], sizes = [32, 8], strides = [1, 1]} : vector<128x8xf32> to vector<32x8xf32>
    %69 = vector.extract_strided_slice %67 {offsets = [32, 0], sizes = [32, 8], strides = [1, 1]} : vector<128x8xf32> to vector<32x8xf32>
    %70 = arith.maximumf %68, %69 : vector<32x8xf32>
    %71 = vector.extract_strided_slice %67 {offsets = [64, 0], sizes = [32, 8], strides = [1, 1]} : vector<128x8xf32> to vector<32x8xf32>
    %72 = arith.maximumf %70, %71 : vector<32x8xf32>
    %73 = vector.extract_strided_slice %67 {offsets = [96, 0], sizes = [32, 8], strides = [1, 1]} : vector<128x8xf32> to vector<32x8xf32>
    %74 = arith.maximumf %72, %73 : vector<32x8xf32>
    %75 = vector.extract_strided_slice %74 {offsets = [0, 0], sizes = [8, 8], strides = [1, 1]} : vector<32x8xf32> to vector<8x8xf32>
    %76 = arith.truncf %75 : vector<8x8xf32> to vector<8x8xbf16>
    %77 = vector.extract_strided_slice %74 {offsets = [8, 0], sizes = [8, 8], strides = [1, 1]} : vector<32x8xf32> to vector<8x8xf32>
    %78 = arith.truncf %77 : vector<8x8xf32> to vector<8x8xbf16>
    %79 = vector.extract_strided_slice %74 {offsets = [16, 0], sizes = [8, 8], strides = [1, 1]} : vector<32x8xf32> to vector<8x8xf32>
    %80 = arith.truncf %79 : vector<8x8xf32> to vector<8x8xbf16>
    %81 = vector.extract_strided_slice %74 {offsets = [24, 0], sizes = [8, 8], strides = [1, 1]} : vector<32x8xf32> to vector<8x8xf32>
    %82 = arith.truncf %81 : vector<8x8xf32> to vector<8x8xbf16>
    %c0_40 = arith.constant 0 : index
    %c0_41 = arith.constant 0 : index
    %c0_42 = arith.constant 0 : index
    %83 = vector.load %arg7[%c0_40, %c0_41, %c0_42] : memref<4x8x32xbf16, #tpu.memory_space<vmem>>, vector<1x8x32xbf16>
    %84 = vector.shape_cast %83 : vector<1x8x32xbf16> to vector<8x32xbf16>
    %cst_43 = arith.constant dense<0.000000e+00> : vector<8x32xf32>
    %85 = tpu.matmul %76, %84, %cst_43 {dimension_numbers = #tpu.dot_dimension_numbers<[1], [0], [0], [1], [0, 0, 1, 1], [], []>} : vector<8x8xbf16>, vector<8x32xbf16>, vector<8x32xf32> -> vector<8x32xf32>
    %c1_44 = arith.constant 1 : index
    %c0_45 = arith.constant 0 : index
    %c0_46 = arith.constant 0 : index
    %86 = vector.load %arg7[%c1_44, %c0_45, %c0_46] : memref<4x8x32xbf16, #tpu.memory_space<vmem>>, vector<1x8x32xbf16>
    %87 = vector.shape_cast %86 : vector<1x8x32xbf16> to vector<8x32xbf16>
    %cst_47 = arith.constant dense<0.000000e+00> : vector<8x32xf32>
    %88 = tpu.matmul %78, %87, %cst_47 {dimension_numbers = #tpu.dot_dimension_numbers<[1], [0], [0], [1], [0, 0, 1, 1], [], []>} : vector<8x8xbf16>, vector<8x32xbf16>, vector<8x32xf32> -> vector<8x32xf32>
    %89 = arith.addf %85, %88 : vector<8x32xf32>
    %c2_48 = arith.constant 2 : index
    %c0_49 = arith.constant 0 : index
    %c0_50 = arith.constant 0 : index
    %90 = vector.load %arg7[%c2_48, %c0_49, %c0_50] : memref<4x8x32xbf16, #tpu.memory_space<vmem>>, vector<1x8x32xbf16>
    %91 = vector.shape_cast %90 : vector<1x8x32xbf16> to vector<8x32xbf16>
    %cst_51 = arith.constant dense<0.000000e+00> : vector<8x32xf32>
    %92 = tpu.matmul %80, %91, %cst_51 {dimension_numbers = #tpu.dot_dimension_numbers<[1], [0], [0], [1], [0, 0, 1, 1], [], []>} : vector<8x8xbf16>, vector<8x32xbf16>, vector<8x32xf32> -> vector<8x32xf32>
    %93 = arith.addf %89, %92 : vector<8x32xf32>
    %c3_52 = arith.constant 3 : index
    %c0_53 = arith.constant 0 : index
    %c0_54 = arith.constant 0 : index
    %94 = vector.load %arg7[%c3_52, %c0_53, %c0_54] : memref<4x8x32xbf16, #tpu.memory_space<vmem>>, vector<1x8x32xbf16>
    %95 = vector.shape_cast %94 : vector<1x8x32xbf16> to vector<8x32xbf16>
    %cst_55 = arith.constant dense<0.000000e+00> : vector<8x32xf32>
    %96 = tpu.matmul %82, %95, %cst_55 {dimension_numbers = #tpu.dot_dimension_numbers<[1], [0], [0], [1], [0, 0, 1, 1], [], []>} : vector<8x8xbf16>, vector<8x32xbf16>, vector<8x32xf32> -> vector<8x32xf32>
    %97 = arith.addf %93, %96 : vector<8x32xf32>
    %c0_56 = arith.constant 0 : index
    %c0_57 = arith.constant 0 : index
    %98 = vector.load %arg10[%c0_56, %c0_57] : memref<1x32xf32, #tpu.memory_space<vmem>>, vector<1x32xf32>
    %99 = vector.broadcast %98 : vector<1x32xf32> to vector<8x32xf32>
    %100 = arith.addf %97, %99 : vector<8x32xf32>
    %c0_58 = arith.constant 0 : index
    %c0_59 = arith.constant 0 : index
    %c0_60 = arith.constant 0 : index
    %101 = vector.load %arg8[%c0_58, %c0_59, %c0_60] : memref<4x8x32xbf16, #tpu.memory_space<vmem>>, vector<1x8x32xbf16>
    %102 = vector.shape_cast %101 : vector<1x8x32xbf16> to vector<8x32xbf16>
    %cst_61 = arith.constant dense<0.000000e+00> : vector<8x32xf32>
    %103 = tpu.matmul %76, %102, %cst_61 {dimension_numbers = #tpu.dot_dimension_numbers<[1], [0], [0], [1], [0, 0, 1, 1], [], []>} : vector<8x8xbf16>, vector<8x32xbf16>, vector<8x32xf32> -> vector<8x32xf32>
    %c1_62 = arith.constant 1 : index
    %c0_63 = arith.constant 0 : index
    %c0_64 = arith.constant 0 : index
    %104 = vector.load %arg8[%c1_62, %c0_63, %c0_64] : memref<4x8x32xbf16, #tpu.memory_space<vmem>>, vector<1x8x32xbf16>
    %105 = vector.shape_cast %104 : vector<1x8x32xbf16> to vector<8x32xbf16>
    %cst_65 = arith.constant dense<0.000000e+00> : vector<8x32xf32>
    %106 = tpu.matmul %78, %105, %cst_65 {dimension_numbers = #tpu.dot_dimension_numbers<[1], [0], [0], [1], [0, 0, 1, 1], [], []>} : vector<8x8xbf16>, vector<8x32xbf16>, vector<8x32xf32> -> vector<8x32xf32>
    %107 = arith.addf %103, %106 : vector<8x32xf32>
    %c2_66 = arith.constant 2 : index
    %c0_67 = arith.constant 0 : index
    %c0_68 = arith.constant 0 : index
    %108 = vector.load %arg8[%c2_66, %c0_67, %c0_68] : memref<4x8x32xbf16, #tpu.memory_space<vmem>>, vector<1x8x32xbf16>
    %109 = vector.shape_cast %108 : vector<1x8x32xbf16> to vector<8x32xbf16>
    %cst_69 = arith.constant dense<0.000000e+00> : vector<8x32xf32>
    %110 = tpu.matmul %80, %109, %cst_69 {dimension_numbers = #tpu.dot_dimension_numbers<[1], [0], [0], [1], [0, 0, 1, 1], [], []>} : vector<8x8xbf16>, vector<8x32xbf16>, vector<8x32xf32> -> vector<8x32xf32>
    %111 = arith.addf %107, %110 : vector<8x32xf32>
    %c3_70 = arith.constant 3 : index
    %c0_71 = arith.constant 0 : index
    %c0_72 = arith.constant 0 : index
    %112 = vector.load %arg8[%c3_70, %c0_71, %c0_72] : memref<4x8x32xbf16, #tpu.memory_space<vmem>>, vector<1x8x32xbf16>
    %113 = vector.shape_cast %112 : vector<1x8x32xbf16> to vector<8x32xbf16>
    %cst_73 = arith.constant dense<0.000000e+00> : vector<8x32xf32>
    %114 = tpu.matmul %82, %113, %cst_73 {dimension_numbers = #tpu.dot_dimension_numbers<[1], [0], [0], [1], [0, 0, 1, 1], [], []>} : vector<8x8xbf16>, vector<8x32xbf16>, vector<8x32xf32> -> vector<8x32xf32>
    %115 = arith.addf %111, %114 : vector<8x32xf32>
    %c0_74 = arith.constant 0 : index
    %c0_75 = arith.constant 0 : index
    %116 = vector.load %arg11[%c0_74, %c0_75] : memref<1x32xf32, #tpu.memory_space<vmem>>, vector<1x32xf32>
    %117 = vector.broadcast %116 : vector<1x32xf32> to vector<8x32xf32>
    %118 = arith.addf %115, %117 : vector<8x32xf32>
    %c0_76 = arith.constant 0 : index
    %c0_77 = arith.constant 0 : index
    %c0_78 = arith.constant 0 : index
    %119 = vector.load %arg9[%c0_76, %c0_77, %c0_78] : memref<4x8x32xbf16, #tpu.memory_space<vmem>>, vector<1x8x32xbf16>
    %120 = vector.shape_cast %119 : vector<1x8x32xbf16> to vector<8x32xbf16>
    %cst_79 = arith.constant dense<0.000000e+00> : vector<8x32xf32>
    %121 = tpu.matmul %76, %120, %cst_79 {dimension_numbers = #tpu.dot_dimension_numbers<[1], [0], [0], [1], [0, 0, 1, 1], [], []>} : vector<8x8xbf16>, vector<8x32xbf16>, vector<8x32xf32> -> vector<8x32xf32>
    %c1_80 = arith.constant 1 : index
    %c0_81 = arith.constant 0 : index
    %c0_82 = arith.constant 0 : index
    %122 = vector.load %arg9[%c1_80, %c0_81, %c0_82] : memref<4x8x32xbf16, #tpu.memory_space<vmem>>, vector<1x8x32xbf16>
    %123 = vector.shape_cast %122 : vector<1x8x32xbf16> to vector<8x32xbf16>
    %cst_83 = arith.constant dense<0.000000e+00> : vector<8x32xf32>
    %124 = tpu.matmul %78, %123, %cst_83 {dimension_numbers = #tpu.dot_dimension_numbers<[1], [0], [0], [1], [0, 0, 1, 1], [], []>} : vector<8x8xbf16>, vector<8x32xbf16>, vector<8x32xf32> -> vector<8x32xf32>
    %125 = arith.addf %121, %124 : vector<8x32xf32>
    %c2_84 = arith.constant 2 : index
    %c0_85 = arith.constant 0 : index
    %c0_86 = arith.constant 0 : index
    %126 = vector.load %arg9[%c2_84, %c0_85, %c0_86] : memref<4x8x32xbf16, #tpu.memory_space<vmem>>, vector<1x8x32xbf16>
    %127 = vector.shape_cast %126 : vector<1x8x32xbf16> to vector<8x32xbf16>
    %cst_87 = arith.constant dense<0.000000e+00> : vector<8x32xf32>
    %128 = tpu.matmul %80, %127, %cst_87 {dimension_numbers = #tpu.dot_dimension_numbers<[1], [0], [0], [1], [0, 0, 1, 1], [], []>} : vector<8x8xbf16>, vector<8x32xbf16>, vector<8x32xf32> -> vector<8x32xf32>
    %129 = arith.addf %125, %128 : vector<8x32xf32>
    %c3_88 = arith.constant 3 : index
    %c0_89 = arith.constant 0 : index
    %c0_90 = arith.constant 0 : index
    %130 = vector.load %arg9[%c3_88, %c0_89, %c0_90] : memref<4x8x32xbf16, #tpu.memory_space<vmem>>, vector<1x8x32xbf16>
    %131 = vector.shape_cast %130 : vector<1x8x32xbf16> to vector<8x32xbf16>
    %cst_91 = arith.constant dense<0.000000e+00> : vector<8x32xf32>
    %132 = tpu.matmul %82, %131, %cst_91 {dimension_numbers = #tpu.dot_dimension_numbers<[1], [0], [0], [1], [0, 0, 1, 1], [], []>} : vector<8x8xbf16>, vector<8x32xbf16>, vector<8x32xf32> -> vector<8x32xf32>
    %133 = arith.addf %129, %132 : vector<8x32xf32>
    %cst_92 = arith.constant 5.000000e-01 : f32
    %134 = vector.broadcast %cst_92 : f32 to vector<8x32xf32>
    %135 = arith.mulf %134, %118 : vector<8x32xf32>
    %136 = math.exp %135 : vector<8x32xf32>
    %c0_93 = arith.constant 0 : index
    %c0_94 = arith.constant 0 : index
    %137 = vector.load %arg15[%c0_93, %c0_94] : memref<8x32xf32, #tpu.memory_space<vmem>>, vector<8x32xf32>
    %138 = arith.mulf %136, %137 : vector<8x32xf32>
    %139 = arith.addf %100, %138 : vector<8x32xf32>
    %140 = arith.truncf %139 : vector<8x32xf32> to vector<8x32xbf16>
    %c0_95 = arith.constant 0 : index
    %c0_96 = arith.constant 0 : index
    %141 = vector.load %arg16[%c0_95, %c0_96] : memref<32x32xbf16, #tpu.memory_space<vmem>>, vector<32x32xbf16>
    %cst_97 = arith.constant dense<0.000000e+00> : vector<8x32xf32>
    %142 = tpu.matmul %140, %141, %cst_97 {dimension_numbers = #tpu.dot_dimension_numbers<[1], [0], [0], [1], [0, 0, 1, 1], [], []>} : vector<8x32xbf16>, vector<32x32xbf16>, vector<8x32xf32> -> vector<8x32xf32>
    %c0_98 = arith.constant 0 : index
    %c0_99 = arith.constant 0 : index
    %143 = vector.load %arg12[%c0_98, %c0_99] : memref<8x1xf32, #tpu.memory_space<vmem>>, vector<8x1xf32>
    %144 = vector.broadcast %143 : vector<8x1xf32> to vector<8x32xf32>
    %145 = arith.mulf %144, %133 : vector<8x32xf32>
    %c0_100 = arith.constant 0 : index
    %c0_101 = arith.constant 0 : index
    %146 = vector.load %arg13[%c0_100, %c0_101] : memref<8x1xf32, #tpu.memory_space<vmem>>, vector<8x1xf32>
    %147 = vector.broadcast %146 : vector<8x1xf32> to vector<8x32xf32>
    %148 = arith.mulf %147, %142 : vector<8x32xf32>
    %149 = arith.addf %145, %148 : vector<8x32xf32>
    %c0_102 = arith.constant 0 : index
    %c0_103 = arith.constant 0 : index
    %150 = vector.load %arg14[%c0_102, %c0_103] : memref<8x1xf32, #tpu.memory_space<vmem>>, vector<8x1xf32>
    %c0_104 = arith.constant 0 : index
    %c0_105 = arith.constant 0 : index
    %151 = vector.load %arg17[%c0_104, %c0_105] : memref<1x32xf32, #tpu.memory_space<vmem>>, vector<1x32xf32>
    %152 = vector.broadcast %150 : vector<8x1xf32> to vector<8x32xf32>
    %153 = vector.broadcast %151 : vector<1x32xf32> to vector<8x32xf32>
    %154 = arith.mulf %152, %153 : vector<8x32xf32>
    %155 = arith.addf %149, %154 : vector<8x32xf32>
    %c0_106 = arith.constant 0 : index
    %c0_107 = arith.constant 0 : index
    %156 = vector.load %arg18[%c0_106, %c0_107] : memref<1x32xf32, #tpu.memory_space<vmem>>, vector<1x32xf32>
    %157 = vector.broadcast %156 : vector<1x32xf32> to vector<8x32xf32>
    %158 = arith.addf %155, %157 : vector<8x32xf32>
    %cst_108 = arith.constant 0.000000e+00 : f32
    %159 = vector.broadcast %cst_108 : f32 to vector<8x32xf32>
    %160 = arith.maximumf %158, %159 : vector<8x32xf32>
    %161 = arith.truncf %160 : vector<8x32xf32> to vector<8x32xbf16>
    %c0_109 = arith.constant 0 : index
    %c0_110 = arith.constant 0 : index
    %162 = vector.load %arg19[%c0_109, %c0_110] : memref<32x32xbf16, #tpu.memory_space<vmem>>, vector<32x32xbf16>
    %cst_111 = arith.constant dense<0.000000e+00> : vector<8x32xf32>
    %163 = tpu.matmul %161, %162, %cst_111 {dimension_numbers = #tpu.dot_dimension_numbers<[1], [0], [0], [1], [0, 0, 1, 1], [], []>} : vector<8x32xbf16>, vector<32x32xbf16>, vector<8x32xf32> -> vector<8x32xf32>
    %c0_112 = arith.constant 0 : index
    %c0_113 = arith.constant 0 : index
    %164 = vector.load %arg20[%c0_112, %c0_113] : memref<1x32xf32, #tpu.memory_space<vmem>>, vector<1x32xf32>
    %165 = vector.broadcast %164 : vector<1x32xf32> to vector<8x32xf32>
    %166 = arith.addf %163, %165 : vector<8x32xf32>
    %167 = arith.truncf %166 : vector<8x32xf32> to vector<8x32xbf16>
    %c0_114 = arith.constant 0 : index
    %c0_115 = arith.constant 0 : index
    %168 = vector.load %arg21[%c0_114, %c0_115] : memref<32x32xbf16, #tpu.memory_space<vmem>>, vector<32x32xbf16>
    %cst_116 = arith.constant dense<0.000000e+00> : vector<8x32xf32>
    %169 = tpu.matmul %167, %168, %cst_116 {dimension_numbers = #tpu.dot_dimension_numbers<[1], [0], [0], [1], [0, 0, 1, 1], [], []>} : vector<8x32xbf16>, vector<32x32xbf16>, vector<8x32xf32> -> vector<8x32xf32>
    %c0_117 = arith.constant 0 : index
    %c0_118 = arith.constant 0 : index
    %170 = vector.load %arg22[%c0_117, %c0_118] : memref<1x32xf32, #tpu.memory_space<vmem>>, vector<1x32xf32>
    %171 = vector.broadcast %170 : vector<1x32xf32> to vector<8x32xf32>
    %172 = arith.addf %169, %171 : vector<8x32xf32>
    %cst_119 = arith.constant 0.000000e+00 : f32
    %173 = vector.broadcast %cst_119 : f32 to vector<8x32xf32>
    %174 = arith.maximumf %172, %173 : vector<8x32xf32>
    %175 = tpu.concatenate %139, %166, %174 in 1 : vector<8x32xf32>, vector<8x32xf32>, vector<8x32xf32> -> vector<8x96xf32>
    %176 = arith.truncf %175 : vector<8x96xf32> to vector<8x96xbf16>
    %c0_120 = arith.constant 0 : index
    %c0_121 = arith.constant 0 : index
    %177 = vector.load %arg23[%c0_120, %c0_121] : memref<96x128xbf16, #tpu.memory_space<vmem>>, vector<96x128xbf16>
    %cst_122 = arith.constant dense<0.000000e+00> : vector<8x128xf32>
    %178 = tpu.matmul %176, %177, %cst_122 {dimension_numbers = #tpu.dot_dimension_numbers<[1], [0], [0], [1], [0, 0, 1, 1], [], []>} : vector<8x96xbf16>, vector<96x128xbf16>, vector<8x128xf32> -> vector<8x128xf32>
    %c0_123 = arith.constant 0 : index
    %c0_124 = arith.constant 0 : index
    %179 = vector.load %arg24[%c0_123, %c0_124] : memref<1x128xf32, #tpu.memory_space<vmem>>, vector<1x128xf32>
    %180 = vector.broadcast %179 : vector<1x128xf32> to vector<8x128xf32>
    %181 = arith.addf %178, %180 : vector<8x128xf32>
    %c0_125 = arith.constant 0 : index
    %c0_126 = arith.constant 0 : index
    %182 = vector.load %arg25[%c0_125, %c0_126] : memref<8x128xf32, #tpu.memory_space<vmem>>, vector<8x128xf32>
    tpu.vector_store %arg25[%c0_125, %c0_126], %181 {strides = array<i32>} : memref<8x128xf32, #tpu.memory_space<vmem>>, vector<8x128xf32>,
    return
  }
  func.func @transform_0(%arg0: i32) -> (i32, i32) {
    %c0_i32 = arith.constant 0 : i32
    %c0_i32_0 = arith.constant 0 : i32
    %c0_i32_1 = arith.constant 0 : i32
    return %c0_i32, %c0_i32_0 : i32, i32
  }
  func.func @transform_1(%arg0: i32) -> (i32, i32) {
    %c0_i32 = arith.constant 0 : i32
    %c0_i32_0 = arith.constant 0 : i32
    %c0_i32_1 = arith.constant 0 : i32
    return %c0_i32, %c0_i32_0 : i32, i32
  }
  func.func @transform_2(%arg0: i32) -> (i32, i32) {
    %c0_i32 = arith.constant 0 : i32
    %c0_i32_0 = arith.constant 0 : i32
    %c0_i32_1 = arith.constant 0 : i32
    return %c0_i32, %c0_i32_0 : i32, i32
  }
  func.func @transform_3(%arg0: i32) -> (i32, i32) {
    %c0_i32 = arith.constant 0 : i32
    %c0_i32_0 = arith.constant 0 : i32
    %c0_i32_1 = arith.constant 0 : i32
    return %c0_i32, %c0_i32_0 : i32, i32
  }
  func.func @transform_4(%arg0: i32) -> (i32, i32, i32) {
    %c0_i32 = arith.constant 0 : i32
    %c0_i32_0 = arith.constant 0 : i32
    %c0_i32_1 = arith.constant 0 : i32
    %c0_i32_2 = arith.constant 0 : i32
    return %c0_i32, %c0_i32_0, %c0_i32_1 : i32, i32, i32
  }
  func.func @transform_5(%arg0: i32) -> (i32, i32) {
    %c0_i32 = arith.constant 0 : i32
    %c0_i32_0 = arith.constant 0 : i32
    %c0_i32_1 = arith.constant 0 : i32
    return %c0_i32, %c0_i32_0 : i32, i32
  }
  func.func @transform_6(%arg0: i32) -> (i32, i32, i32) {
    %c0_i32 = arith.constant 0 : i32
    %c0_i32_0 = arith.constant 0 : i32
    %c0_i32_1 = arith.constant 0 : i32
    %c0_i32_2 = arith.constant 0 : i32
    return %c0_i32, %c0_i32_0, %c0_i32_1 : i32, i32, i32
  }
  func.func @transform_7(%arg0: i32) -> (i32, i32, i32) {
    %c0_i32 = arith.constant 0 : i32
    %c0_i32_0 = arith.constant 0 : i32
    %c0_i32_1 = arith.constant 0 : i32
    %c0_i32_2 = arith.constant 0 : i32
    return %c0_i32, %c0_i32_0, %c0_i32_1 : i32, i32, i32
  }
  func.func @transform_8(%arg0: i32) -> (i32, i32, i32) {
    %c0_i32 = arith.constant 0 : i32
    %c0_i32_0 = arith.constant 0 : i32
    %c0_i32_1 = arith.constant 0 : i32
    %c0_i32_2 = arith.constant 0 : i32
    return %c0_i32, %c0_i32_0, %c0_i32_1 : i32, i32, i32
  }
  func.func @transform_9(%arg0: i32) -> (i32, i32) {
    %c0_i32 = arith.constant 0 : i32
    %c0_i32_0 = arith.constant 0 : i32
    %c0_i32_1 = arith.constant 0 : i32
    return %c0_i32, %c0_i32_0 : i32, i32
  }
  func.func @transform_10(%arg0: i32) -> (i32, i32) {
    %c0_i32 = arith.constant 0 : i32
    %c0_i32_0 = arith.constant 0 : i32
    %c0_i32_1 = arith.constant 0 : i32
    return %c0_i32, %c0_i32_0 : i32, i32
  }
  func.func @transform_11(%arg0: i32) -> (i32, i32) {
    %c0_i32 = arith.constant 0 : i32
    %c0_i32_0 = arith.constant 0 : i32
    %c0_i32_1 = arith.constant 0 : i32
    return %c0_i32, %c0_i32_0 : i32, i32
  }
  func.func @transform_12(%arg0: i32) -> (i32, i32) {
    %c0_i32 = arith.constant 0 : i32
    %c0_i32_0 = arith.constant 0 : i32
    %c0_i32_1 = arith.constant 0 : i32
    return %c0_i32, %c0_i32_0 : i32, i32
  }
  func.func @transform_13(%arg0: i32) -> (i32, i32) {
    %c0_i32 = arith.constant 0 : i32
    %c0_i32_0 = arith.constant 0 : i32
    %c0_i32_1 = arith.constant 0 : i32
    return %c0_i32, %c0_i32_0 : i32, i32
  }
  func.func @transform_14(%arg0: i32) -> (i32, i32) {
    %c0_i32 = arith.constant 0 : i32
    %c0_i32_0 = arith.constant 0 : i32
    %c0_i32_1 = arith.constant 0 : i32
    return %c0_i32, %c0_i32_0 : i32, i32
  }
  func.func @transform_15(%arg0: i32) -> (i32, i32) {
    %c0_i32 = arith.constant 0 : i32
    %c0_i32_0 = arith.constant 0 : i32
    %c0_i32_1 = arith.constant 0 : i32
    return %c0_i32, %c0_i32_0 : i32, i32
  }
  func.func @transform_16(%arg0: i32) -> (i32, i32) {
    %c0_i32 = arith.constant 0 : i32
    %c0_i32_0 = arith.constant 0 : i32
    %c0_i32_1 = arith.constant 0 : i32
    return %c0_i32, %c0_i32_0 : i32, i32
  }
  func.func @transform_17(%arg0: i32) -> (i32, i32) {
    %c0_i32 = arith.constant 0 : i32
    %c0_i32_0 = arith.constant 0 : i32
    %c0_i32_1 = arith.constant 0 : i32
    return %c0_i32, %c0_i32_0 : i32, i32
  }
  func.func @transform_18(%arg0: i32) -> (i32, i32) {
    %c0_i32 = arith.constant 0 : i32
    %c0_i32_0 = arith.constant 0 : i32
    %c0_i32_1 = arith.constant 0 : i32
    return %c0_i32, %c0_i32_0 : i32, i32
  }
  func.func @transform_19(%arg0: i32) -> (i32, i32) {
    %c0_i32 = arith.constant 0 : i32
    %c0_i32_0 = arith.constant 0 : i32
    %c0_i32_1 = arith.constant 0 : i32
    return %c0_i32, %c0_i32_0 : i32, i32
  }
  func.func @transform_20(%arg0: i32) -> (i32, i32) {
    %c0_i32 = arith.constant 0 : i32
    %c0_i32_0 = arith.constant 0 : i32
    %c0_i32_1 = arith.constant 0 : i32
    return %c0_i32, %c0_i32_0 : i32, i32
  }
  func.func @transform_21(%arg0: i32) -> (i32, i32) {
    %c0_i32 = arith.constant 0 : i32
    %c0_i32_0 = arith.constant 0 : i32
    %c0_i32_1 = arith.constant 0 : i32
    return %c0_i32, %c0_i32_0 : i32, i32
  }
  func.func @transform_22(%arg0: i32) -> (i32, i32) {
    %c0_i32 = arith.constant 0 : i32
    %c0_i32_0 = arith.constant 0 : i32
    %c0_i32_1 = arith.constant 0 : i32
    return %c0_i32, %c0_i32_0 : i32, i32
  }
  func.func @transform_23(%arg0: i32) -> (i32, i32) {
    %c0_i32 = arith.constant 0 : i32
    %c0_i32_0 = arith.constant 0 : i32
    %c0_i32_1 = arith.constant 0 : i32
    return %c0_i32, %c0_i32_0 : i32, i32
  }
  func.func @transform_24(%arg0: i32) -> (i32, i32) {
    %c0_i32 = arith.constant 0 : i32
    %c0_i32_0 = arith.constant 0 : i32
    %c0_i32_1 = arith.constant 0 : i32
    return %c0_i32, %c0_i32_0 : i32, i32
  }
}

</mosaic_0001>

<bundles_post_ra>
// kernel: diffusion_forward.1
= control target key start
LH: loop header
LB: loop body
LE: loop exit
PB: predicated region body
PF: predicated region fallthrough
CT: control target
= control target key end

     0   :  { %vm287_vm0 = vcmask 293888   ;;  %vm366_vm1 = vcmask 1041408   ;;  %vm1213_vm2 = vcmask 850944   ;;  %vm1430_vm3 = vcmask 1043456   ;;  %s6693_s1 = inlined_call_operand.vmem [shape: bf16[36,8], index: 1, kind: input, shape index: {}]   ;;  %s6694_s0 = inlined_call_operand.vmem [shape: bf16[416,36], index: 0, kind: input, shape index: {}]   ;;  %s6695_s3 = inlined_call_operand.vmem [shape: bf16[1152,104], index: 3, kind: input, shape index: {}]   ;;  %s6696_s2 = inlined_call_operand.vmem [shape: f32[1,8], index: 2, kind: input, shape index: {}]   ;;  %s6697_s4 = inlined_call_operand.vmem [shape: bf16[9,8,8], index: 4, kind: input, shape index: {}]   ;;  %s6698_s6 = inlined_call_operand.vmem [shape: bf16[4,8,32], index: 6, kind: input, shape index: {}]   ;;  %s6699_s5 = inlined_call_operand.vmem [shape: f32[1,8], index: 5, kind: input, shape index: {}]   ;;  %s6700_s11 = inlined_call_operand.vmem [shape: f32[8,1], index: 11, kind: input, shape index: {}]   ;;  %s6701_s7 = inlined_call_operand.vmem [shape: bf16[4,8,32], index: 7, kind: input, shape index: {}]   ;;  %s6702_s8 = inlined_call_operand.vmem [shape: bf16[4,8,32], index: 8, kind: input, shape index: {}]   ;;  %s6703_s15 = inlined_call_operand.vmem [shape: bf16[32,32], index: 15, kind: input, shape index: {}]   ;;  %s6704_s12 = inlined_call_operand.vmem [shape: f32[8,1], index: 12, kind: input, shape index: {}]   ;;  %s6705_s13 = inlined_call_operand.vmem [shape: f32[8,1], index: 13, kind: input, shape index: {}]   ;;  %s6706_s10 = inlined_call_operand.vmem [shape: f32[1,32], index: 10, kind: input, shape index: {}]   ;;  %s6707_s9 = inlined_call_operand.vmem [shape: f32[1,32], index: 9, kind: input, shape index: {}]   ;;  %s6708_s14 = inlined_call_operand.vmem [shape: f32[8,32], index: 14, kind: input, shape index: {}]   ;;  %s6709_s18 = inlined_call_operand.vmem [shape: bf16[32,32], index: 18, kind: input, shape index: {}]   ;;  %s6710_s20 = inlined_call_operand.vmem [shape: bf16[32,32], index: 20, kind: input, shape index: {}]   ;;  %s6711_s16 = inlined_call_operand.vmem [shape: f32[1,32], index: 16, kind: input, shape index: {}]   ;;  %s6712_s17 = inlined_call_operand.vmem [shape: f32[1,32], index: 17, kind: input, shape index: {}]   ;;  %s6713_s19 = inlined_call_operand.vmem [shape: f32[1,32], index: 19, kind: input, shape index: {}]   ;;  %s6714_s22 = inlined_call_operand.vmem [shape: bf16[96,128], index: 22, kind: input, shape index: {}]   ;;  %s6715_s21 = inlined_call_operand.vmem [shape: f32[1,32], index: 21, kind: input, shape index: {}]   ;;  %s6716_s23 = inlined_call_operand.vmem [shape: f32[1,128], index: 23, kind: input, shape index: {}]   ;;  %s6717_s24 = inlined_call_operand.vmem [shape: f32[8,128], index: 24, kind: output, shape index: {}]  }
   0x1   :  { %6724 = sst [smem:[#allocation2_spill]] %s6693_s1  ;;  %vm2118_vm4 = vcmask 64512   ;;  %vm5665_vm5 = vmmov 0   ;;  %vm4010_vm6 = vcmask 261120   ;;  %vm4237_vm7 = vcmask 523264  }
   0x2   :  { %6725 = sst [smem:[#allocation3_spill]] %s6694_s0  ;;  %s6733_s27 = sld [smem:[#allocation2_spill]]  ;;  %vm4295_vm8 = vcmask 785408  }
   0x3   :  { %6726 = sst [smem:[#allocation4_spill]] %s6695_s3  ;;  %s6734_s30 = sld [smem:[#allocation3_spill]] }
   0x4   :  { %6727 = sst [smem:[#allocation5_spill]] %s6696_s2  ;;  %s6735_s3 = sld [smem:[#allocation4_spill]] }
   0x5   :  { %6728 = sst [smem:[#allocation6_spill]] %s6697_s4  ;;  %s6736_s1 = sld [smem:[#allocation5_spill]] }
   0x6   :  { %6729 = sst [smem:[#allocation7_spill]] %s6698_s6 }
   0x7   :  { %6730 = sst [smem:[#allocation8_spill]] %s6699_s5  ;;  %s6737_s5 = sld [smem:[#allocation6_spill]] }
   0x8   :  { %6731 = sst [smem:[#allocation9_spill]] %s6700_s11  ;;  %v5549_v0 = vld [vmem:[%s6733_s27] sm:$0xff]   ;;  %v5550_v1 = vld [vmem:[%s6733_s27 + $0x8] sm:$0xff]   ;;  %v5551_v2 = vld [vmem:[%s6733_s27 + $0x10] ss:$0 sps:$4 sm:$0x33]  }
   0x9   :  { %6732 = sst [smem:[#allocation10_spill]] %s6701_s7  ;;  %4898 = vmatprep.subr.bf16.mxu0 %v5549_v0  ;;  %v5552_v3 = vld [vmem:[%s6734_s30] sm:$0xff]   ;;  %v368_v4 = vsel %vm366_vm1, %v5551_v2, 0  ;;  %v5553_v5 = vld [vmem:[%s6734_s30 + $0x8] sm:$0xff]   ;;  %v5554_v6 = vld [vmem:[%s6734_s30 + $0x10] sm:$0xff]   ;;  %s6738_s4 = sld [smem:[#allocation7_spill]] }
   0xa   :  { %4899 = vmatpush3.bf16.msra.mxu0 %v5549_v0  ;;  %4904 = vmatprep.mubr.msk.bf16.mxu0 %vm287_vm0, %v5552_v3  ;;  %v5555_v7 = vld [vmem:[%s6734_s30 + $0x18] sm:$0xff]   ;;  %v5556_v8 = vld [vmem:[%s6734_s30 + $0x20] sm:$0xff]   ;;  %v5557_v9 = vld [vmem:[%s6734_s30 + $0x28] sm:$0xff]   ;;  %s6740_s28 = sld [smem:[#allocation9_spill]]  ;;  %s6741_s0 = sld [smem:[#allocation10_spill]] }
   0xb   :  { %4900 = vmatprep.subr.bf16.mxu0 %v5550_v1  ;;  %v5558_v10 = vld [vmem:[%s6734_s30 + $0x30] sm:$0xff]   ;;  %v5559_v11 = vld [vmem:[%s6734_s30 + $0x38] sm:$0xff]   ;;  %v5560_v12 = vld [vmem:[%s6734_s30 + $0x40] sm:$0xff]  }
   0xc   :  { %v5561_v13 = vld [vmem:[%s6734_s30 + $0x48] sm:$0xff]   ;;  %v5562_v14 = vld [vmem:[%s6734_s30 + $0x50] sm:$0xff]   ;;  %v5563_v15 = vld [vmem:[%s6734_s30 + $0x58] sm:$0xff]  }
   0xd   :  { %v5564_v16 = vld [vmem:[%s6734_s30 + $0x60] sm:$0xff]   ;;  %v5565_v17 = vld [vmem:[%s6734_s30 + $0x68] sm:$0xff]   ;;  %v5566_v18 = vld [vmem:[%s6734_s30 + $0x70] sm:$0xff]  }
   0xe   :  { %4901 = vmatpush3.bf16.msra.mxu0 %v5550_v1  ;;  %v5567_v19 = vld [vmem:[%s6734_s30 + $0x78] sm:$0xff]   ;;  %v5568_v20 = vld [vmem:[%s6734_s30 + $0x80] sm:$0xff]   ;;  %v5569_v21 = vld [vmem:[%s6734_s30 + $0x88] sm:$0xff]  }
   0xf   :  { %5530 = vmatprep.subr.msk.bf16.mxu0 %vm366_vm1, %v5551_v2  ;;  %v5570_v22 = vld [vmem:[%s6734_s30 + $0x90] sm:$0xff]   ;;  %v5571_v23 = vld [vmem:[%s6734_s30 + $0x98] sm:$0xff]   ;;  %v5572_v24 = vld [vmem:[%s6734_s30 + $0xa0] sm:$0xff]  }
  0x10   :  { %v5573_v25 = vld [vmem:[%s6734_s30 + $0xa8] sm:$0xff]   ;;  %v5574_v26 = vld [vmem:[%s6734_s30 + $0xb0] sm:$0xff]   ;;  %v5575_v27 = vld [vmem:[%s6734_s30 + $0xb8] sm:$0xff]  }
  0x11   :  { %v5576_v28 = vld [vmem:[%s6734_s30 + $0xc0] sm:$0xff]   ;;  %v5577_v29 = vld [vmem:[%s6734_s30 + $0xc8] sm:$0xff]  }
  0x12   :  { %4903 = vmatpush3.bf16.msra.mxu0 %v368_v4  ;;  %v5578_v30 = vld [vmem:[%s6735_s3] sm:$0xff]  }
  0x13   :  { %4970 = vmatprep.mubr.msk.bf16.mxu1 %vm1213_vm2, %v5578_v30  ;;  %v5916_v43 = vld [vmem:[%s6736_s1] ss:$0 sm:$0xff] }
  0x15   :  { %4905 = vmatmul.mubr.msk.bf16.vlgmr.msra.gmra.mrb[0].mxu0 %vm287_vm0, %v5553_v5 }
  0x16   :  { %4908 = vmatprep.mubr.msk.bf16.mxu0 %vm287_vm0, %v5554_v6 }
  0x1d   :  { %4909 = vmatmul.mubr.msk.bf16.gmra.mrb[4].mxu0 %vm287_vm0, %v5555_v7 }
  0x1e   :  { %4912 = vmatprep.mubr.msk.bf16.mxu0 %vm287_vm0, %v5556_v8 }
  0x25   :  { %4913 = vmatmul.mubr.msk.bf16.gmra.mrb[8].mxu0 %vm287_vm0, %v5557_v9 }
  0x26   :  { %4916 = vmatprep.mubr.msk.bf16.mxu0 %vm287_vm0, %v5558_v10 }
  0x2d   :  { %4917 = vmatmul.mubr.msk.bf16.gmra.mrb[12].mxu0 %vm287_vm0, %v5559_v11 }
  0x2e   :  { %4920 = vmatprep.mubr.msk.bf16.mxu0 %vm287_vm0, %v5560_v12 }
  0x35   :  { %4921 = vmatmul.mubr.msk.bf16.gmra.mrb[16].mxu0 %vm287_vm0, %v5561_v13 }
  0x36   :  { %4924 = vmatprep.mubr.msk.bf16.mxu0 %vm287_vm0, %v5562_v14 }
  0x3d   :  { %4925 = vmatmul.mubr.msk.bf16.gmra.mrb[20].mxu0 %vm287_vm0, %v5563_v15 }
  0x3e   :  { %4928 = vmatprep.mubr.msk.bf16.mxu0 %vm287_vm0, %v5564_v16 }
  0x45   :  { %4929 = vmatmul.mubr.msk.bf16.gmra.mrb[24].mxu0 %vm287_vm0, %v5565_v17 }
  0x46   :  { %4932 = vmatprep.mubr.msk.bf16.mxu0 %vm287_vm0, %v5566_v18 }
  0x4d   :  { %4933 = vmatmul.mubr.msk.bf16.gmra.mrb[28].mxu0 %vm287_vm0, %v5567_v19 }
  0x4e   :  { %4936 = vmatprep.mubr.msk.bf16.mxu0 %vm287_vm0, %v5568_v20 }
  0x55   :  { %4937 = vmatmul.mubr.msk.bf16.gmra.mrb[32].mxu0 %vm287_vm0, %v5569_v21 }
  0x56   :  { %4940 = vmatprep.mubr.msk.bf16.mxu0 %vm287_vm0, %v5570_v22 }
  0x5d   :  { %4941 = vmatmul.mubr.msk.bf16.gmra.mrb[36].mxu0 %vm287_vm0, %v5571_v23 }
  0x5e   :  { %4944 = vmatprep.mubr.msk.bf16.mxu0 %vm287_vm0, %v5572_v24 }
  0x65   :  { %4945 = vmatmul.mubr.msk.bf16.gmra.mrb[40].mxu0 %vm287_vm0, %v5573_v25 }
  0x66   :  { %4948 = vmatprep.mubr.msk.bf16.mxu0 %vm287_vm0, %v5574_v26 }
  0x6d   :  { %4949 = vmatmul.mubr.msk.bf16.gmra.mrb[44].mxu0 %vm287_vm0, %v5575_v27 }
  0x6e   :  { %4952 = vmatprep.mubr.msk.bf16.mxu0 %vm287_vm0, %v5576_v28 }
  0x75   :  { %4953 = vmatmul.mubr.msk.bf16.gmra.mrb[48].mxu0 %vm287_vm0, %v5577_v29 }
  0xe8   :  { %v4906_v31 = vpop.f32.mrb[0].mxu0 }
  0xe9   :  { %v404_v32 = vpop.f32.mrb[1].mxu0  ;;  %v413_v46 = vadd.f32 %v4906_v31, %v5916_v43 }
  0xea   :  { %v4907_v33 = vpop.f32.mrb[2].mxu0  ;;  %v405_v49 = vadd.f32 %v5916_v43, %v404_v32 }
  0xeb   :  { %v407_v34 = vpop.f32.mrb[3].mxu0  ;;  %v613_v56 = vmax.f32 %v413_v46, 0.0  ;;  %v416_v63 = vadd.f32 %v4907_v33, %v5916_v43 }
  0xec   :  { %v408_v44 = vadd.f32 %v5916_v43, %v407_v34  ;;  %v611_v59 = vmax.f32 %v405_v49, 0.0 }
  0xed   :  { %v614_v12 = vmax.f32 %v416_v63, 0.0 }
  0xee   :  { %v612_v50 = vmax.f32 %v408_v44, 0.0 }
  0xf0   :  { %v4910_v35 = vpop.f32.mrb[4].mxu0 }
  0xf1   :  { %v420_v36 = vpop.f32.mrb[5].mxu0  ;;  %v429_v2 = vadd.f32 %v4910_v35, %v5916_v43 }
  0xf2   :  { %v4911_v37 = vpop.f32.mrb[6].mxu0  ;;  %v421_v5 = vadd.f32 %v5916_v43, %v420_v36 }
  0xf3   :  { %v423_v38 = vpop.f32.mrb[7].mxu0  ;;  %v617_v15 = vmax.f32 %v429_v2, 0.0  ;;  %v432_v23 = vadd.f32 %v4911_v37, %v5916_v43 }
  0xf4   :  { %v424_v60 = vadd.f32 %v5916_v43, %v423_v38  ;;  %v615_v18 = vmax.f32 %v421_v5, 0.0 }
  0xf5   :  { %v618_v36 = vmax.f32 %v432_v23, 0.0 }
  0xf6   :  { %v616_v6 = vmax.f32 %v424_v60, 0.0 }
  0xf8   :  { %v4914_v39 = vpop.f32.mrb[8].mxu0 }
  0xf9   :  { %v436_v40 = vpop.f32.mrb[9].mxu0  ;;  %v445_v26 = vadd.f32 %v4914_v39, %v5916_v43 }
  0xfa   :  { %v5911_v41 = vpop.f32.mrb[10].mxu0  ;;  %v437_v29 = vadd.f32 %v5916_v43, %v436_v40 }
  0xfb   :  { %v439_v42 = vpop.f32.mrb[11].mxu0  ;;  %v448_v40 = vadd.f32 %v5911_v41, %v5916_v43 }
  0xfc   :  { %v440_v19 = vadd.f32 %v5916_v43, %v439_v42  ;;  %v621_v42 = vmax.f32 %v445_v26, 0.0 }
  0xfe   :  { %v620_v30 = vmax.f32 %v440_v19, 0.0 }
 0x100   :  { %v4918_v45 = vpop.f32.mrb[12].mxu0 }
 0x101   :  { %v461_v47 = vadd.f32 %v4918_v45, %v5916_v43  ;;  %v5921_v48 = vpop.f32.mrb[13].mxu0  ;;  %v619_v45 = vmax.f32 %v437_v29, 0.0 }
 0x102   :  { %v4919_v51 = vpop.f32.mrb[14].mxu0 }
 0x103   :  { %v625_v52 = vmax.f32 %v461_v47, 0.0  ;;  %v464_v53 = vadd.f32 %v4919_v51, %v5916_v43  ;;  %v455_v54 = vpop.f32.mrb[15].mxu0 }
 0x104   :  { %v456_v55 = vadd.f32 %v5916_v43, %v455_v54  ;;  %v453_v54 = vadd.f32 %v5916_v43, %v5921_v48 }
 0x105   :  { %v5926_v57 = vmax.f32 %v612_v50, %v625_v52  ;;  %v626_v58 = vmax.f32 %v464_v53, 0.0 }
 0x106   :  { %v624_v61 = vmax.f32 %v456_v55, 0.0 }
 0x107   :  { %v5929_v62 = vmax.f32 %v613_v56, %v626_v58 }
 0x108   :  { %v663_v0 = vmax.f32 %v611_v59, %v624_v61  ;;  %v4922_v1 = vpop.f32.mrb[16].mxu0  ;;  %v622_v61 = vmax.f32 %v448_v40, 0.0 }
 0x109   :  { %v477_v3 = vadd.f32 %v4922_v1, %v5916_v43  ;;  %v468_v4 = vpop.f32.mrb[17].mxu0 }
 0x10a   :  { %v469_v7 = vadd.f32 %v5916_v43, %v468_v4  ;;  %v4923_v8 = vpop.f32.mrb[18].mxu0 }
 0x10b   :  { %v629_v9 = vmax.f32 %v477_v3, 0.0  ;;  %v480_v10 = vadd.f32 %v4923_v8, %v5916_v43  ;;  %v471_v11 = vpop.f32.mrb[19].mxu0  ;;  %v623_v3 = vmax.f32 %v453_v54, 0.0 }
 0x10c   :  { %v627_v13 = vmax.f32 %v469_v7, 0.0  ;;  %v472_v14 = vadd.f32 %v5916_v43, %v471_v11 }
 0x10d   :  { %v5938_v16 = vmax.f32 %v616_v6, %v629_v9  ;;  %v630_v17 = vmax.f32 %v480_v10, 0.0 }
 0x10e   :  { %v666_v20 = vmax.f32 %v614_v12, %v627_v13  ;;  %v628_v21 = vmax.f32 %v472_v14, 0.0 }
 0x10f   :  { %v5941_v22 = vmax.f32 %v617_v15, %v630_v17 }
 0x110   :  { %v667_v24 = vmax.f32 %v615_v18, %v628_v21  ;;  %v4926_v25 = vpop.f32.mrb[20].mxu0 }
 0x111   :  { %v493_v27 = vadd.f32 %v4926_v25, %v5916_v43  ;;  %v484_v28 = vpop.f32.mrb[21].mxu0 }
 0x112   :  { %v485_v31 = vadd.f32 %v5916_v43, %v484_v28  ;;  %v4927_v32 = vpop.f32.mrb[22].mxu0 }
 0x113   :  { %v633_v33 = vmax.f32 %v493_v27, 0.0  ;;  %v496_v34 = vadd.f32 %v4927_v32, %v5916_v43  ;;  %v487_v35 = vpop.f32.mrb[23].mxu0 }
 0x114   :  { %v631_v38 = vmax.f32 %v485_v31, 0.0  ;;  %v488_v37 = vadd.f32 %v5916_v43, %v487_v35 }
 0x115   :  { %v672_v44 = vmax.f32 %v620_v30, %v633_v33  ;;  %v634_v39 = vmax.f32 %v496_v34, 0.0 }
 0x116   :  { %v670_v46 = vmax.f32 %v618_v36, %v631_v38  ;;  %v632_v47 = vmax.f32 %v488_v37, 0.0 }
 0x117   :  { %v5950_v49 = vmax.f32 %v621_v42, %v634_v39 }
 0x118   :  { %v671_v50 = vmax.f32 %v619_v45, %v632_v47  ;;  %v4930_v51 = vpop.f32.mrb[24].mxu0 }
 0x119   :  { %v509_v52 = vadd.f32 %v4930_v51, %v5916_v43  ;;  %v500_v53 = vpop.f32.mrb[25].mxu0 }
 0x11a   :  { %v501_v55 = vadd.f32 %v5916_v43, %v500_v53  ;;  %v4931_v56 = vpop.f32.mrb[26].mxu0 }
 0x11b   :  { %v637_v58 = vmax.f32 %v509_v52, 0.0  ;;  %v512_v59 = vadd.f32 %v4931_v56, %v5916_v43  ;;  %v503_v60 = vpop.f32.mrb[27].mxu0 }
 0x11c   :  { %v635_v63 = vmax.f32 %v501_v55, 0.0  ;;  %v504_v1 = vadd.f32 %v5916_v43, %v503_v60 }
 0x11d   :  { %v676_v41 = vmax.f32 %v663_v0, %v637_v58  ;;  %v638_v2 = vmax.f32 %v512_v59, 0.0 }
 0x11e   :  { %v674_v4 = vmax.f32 %v622_v61, %v635_v63  ;;  %v636_v5 = vmax.f32 %v504_v1, 0.0 }
 0x11f   :  { %v677_v6 = vmax.f32 %v5926_v57, %v638_v2 }
 0x120   :  { %v675_v7 = vmax.f32 %v623_v3, %v636_v5  ;;  %v4934_v48 = vpop.f32.mrb[28].mxu0 }
 0x121   :  { %v525_v8 = vadd.f32 %v4934_v48, %v5916_v43  ;;  %v516_v9 = vpop.f32.mrb[29].mxu0 }
 0x122   :  { %v517_v10 = vadd.f32 %v5916_v43, %v516_v9  ;;  %v4935_v11 = vpop.f32.mrb[30].mxu0 }
 0x123   :  { %v641_v12 = vmax.f32 %v525_v8, 0.0  ;;  %v528_v13 = vadd.f32 %v4935_v11, %v5916_v43  ;;  %v519_v14 = vpop.f32.mrb[31].mxu0 }
 0x124   :  { %v639_v15 = vmax.f32 %v517_v10, 0.0  ;;  %v520_v0 = vadd.f32 %v5916_v43, %v519_v14 }
 0x125   :  { %v680_v17 = vmax.f32 %v667_v24, %v641_v12  ;;  %v642_v18 = vmax.f32 %v528_v13, 0.0 }
 0x126   :  { %v678_v19 = vmax.f32 %v5929_v62, %v639_v15  ;;  %v640_v57 = vmax.f32 %v520_v0, 0.0 }
 0x127   :  { %v5967_v21 = vmax.f32 %v5938_v16, %v642_v18 }
 0x128   :  { %v679_v23 = vmax.f32 %v666_v20, %v640_v57  ;;  %v4938_v25 = vpop.f32.mrb[32].mxu0 }
 0x129   :  { %v541_v26 = vadd.f32 %v4938_v25, %v5916_v43  ;;  %v532_v27 = vpop.f32.mrb[33].mxu0 }
 0x12a   :  { %v533_v28 = vadd.f32 %v5916_v43, %v532_v27  ;;  %v4939_v29 = vpop.f32.mrb[34].mxu0 }
 0x12b   :  { %v645_v30 = vmax.f32 %v541_v26, 0.0  ;;  %v544_v31 = vadd.f32 %v4939_v29, %v5916_v43  ;;  %v535_v32 = vpop.f32.mrb[35].mxu0 }
 0x12c   :  { %v643_v24 = vmax.f32 %v533_v28, 0.0  ;;  %v536_v33 = vadd.f32 %v5916_v43, %v535_v32 }
 0x12d   :  { %v684_v62 = vmax.f32 %v671_v50, %v645_v30  ;;  %v646_v34 = vmax.f32 %v544_v31, 0.0 }
 0x12e   :  { %v682_v16 = vmax.f32 %v5941_v22, %v643_v24  ;;  %v644_v35 = vmax.f32 %v536_v33, 0.0 }
 0x12f   :  { %v5974_v20 = vmax.f32 %v672_v44, %v646_v34 }
 0x130   :  { %v683_v36 = vmax.f32 %v670_v46, %v644_v35  ;;  %v4942_v38 = vpop.f32.mrb[36].mxu0 }
 0x131   :  { %v557_v37 = vadd.f32 %v4942_v38, %v5916_v43  ;;  %v548_v42 = vpop.f32.mrb[37].mxu0 }
 0x132   :  { %v549_v39 = vadd.f32 %v5916_v43, %v548_v42  ;;  %v4943_v45 = vpop.f32.mrb[38].mxu0 }
 0x133   :  { %v649_v47 = vmax.f32 %v557_v37, 0.0  ;;  %v560_v40 = vadd.f32 %v4943_v45, %v5916_v43  ;;  %v551_v51 = vpop.f32.mrb[39].mxu0 }
 0x134   :  { %v647_v52 = vmax.f32 %v549_v39, 0.0  ;;  %v552_v50 = vadd.f32 %v5916_v43, %v551_v51 }
 0x135   :  { %v5980_v53 = vmax.f32 %v675_v7, %v649_v47  ;;  %v650_v22 = vmax.f32 %v560_v40, 0.0 }
 0x136   :  { %v5983_v44 = vmax.f32 %v5950_v49, %v647_v52  ;;  %v648_v46 = vmax.f32 %v552_v50, 0.0  ;;  %v5580_v50 = vld [vmem:[%s6735_s3 + $0x10] sm:$0xff]  }
 0x137   :  { %v689_v54 = vmax.f32 %v676_v41, %v650_v22  ;;  %v5582_v22 = vld [vmem:[%s6735_s3 + $0x20] sm:$0xff]  }
 0x138   :  { %v687_v55 = vmax.f32 %v674_v4, %v648_v46  ;;  %v4946_v56 = vpop.f32.mrb[40].mxu0 }
 0x139   :  { %v573_v58 = vadd.f32 %v4946_v56, %v5916_v43  ;;  %v564_v59 = vpop.f32.mrb[41].mxu0  ;;  %v5585_v56 = vld [vmem:[%s6735_s3 + $0x38] sm:$0xff]  }
 0x13a   :  { %v565_v60 = vadd.f32 %v5916_v43, %v564_v59  ;;  %v4947_v61 = vpop.f32.mrb[42].mxu0  ;;  %v5587_v59 = vld [vmem:[%s6735_s3 + $0x48] sm:$0xff]  }
 0x13b   :  { %v653_v63 = vmax.f32 %v573_v58, 0.0  ;;  %v576_v1 = vadd.f32 %v4947_v61, %v5916_v43  ;;  %v567_v2 = vpop.f32.mrb[43].mxu0  ;;  %v5586_v58 = vld [vmem:[%s6735_s3 + $0x40] sm:$0xff]   ;;  %v5589_v61 = vld [vmem:[%s6735_s3 + $0x58] sm:$0xff]  }
 0x13c   :  { %v651_v3 = vmax.f32 %v565_v60, 0.0  ;;  %v568_v5 = vadd.f32 %v5916_v43, %v567_v2  ;;  %v5588_v60 = vld [vmem:[%s6735_s3 + $0x50] sm:$0xff]  }
 0x13d   :  { %v692_v7 = vmax.f32 %v679_v23, %v653_v63  ;;  %v654_v49 = vmax.f32 %v576_v1, 0.0  ;;  %v5590_v63 = vld [vmem:[%s6735_s3 + $0x60] sm:$0xff]   ;;  %v5591_v1 = vld [vmem:[%s6735_s3 + $0x68] sm:$0xff]   ;;  %v5592_v2 = vld [vmem:[%s6735_s3 + $0x70] sm:$0xff]  }
 0x13e   :  { %v690_v48 = vmax.f32 %v677_v6, %v651_v3  ;;  %v652_v8 = vmax.f32 %v568_v5, 0.0  ;;  %v5593_v3 = vld [vmem:[%s6735_s3 + $0x78] sm:$0xff]   ;;  %v5594_v5 = vld [vmem:[%s6735_s3 + $0x80] sm:$0xff]  }
 0x13f   :  { %v693_v41 = vmax.f32 %v680_v17, %v654_v49  ;;  %v5596_v49 = vld [vmem:[%s6735_s3 + $0x90] sm:$0xff]  }
 0x140   :  { %v691_v4 = vmax.f32 %v678_v19, %v652_v8  ;;  %v4950_v9 = vpop.f32.mrb[44].mxu0  ;;  %v846_v10 = vpack.c.bf16 %v690_v48, %v689_v54  ;;  %v5583_v54 = vld [vmem:[%s6735_s3 + $0x28] sm:$0xff]   ;;  %v5597_v48 = vld [vmem:[%s6735_s3 + $0x98] sm:$0xff]   ;;  %v5598_v8 = vld [vmem:[%s6735_s3 + $0xa0] sm:$0xff]  }
 0x141   :  { %v589_v11 = vadd.f32 %v4950_v9, %v5916_v43  ;;  %v580_v12 = vpop.f32.mrb[45].mxu0  ;;  %v5601_v9 = vld [vmem:[%s6735_s3 + $0xb8] sm:$0xff]  }
 0x142   :  { %v581_v13 = vadd.f32 %v5916_v43, %v580_v12  ;;  %v4951_v14 = vpop.f32.mrb[46].mxu0  ;;  %4956 = vmatprep.subr.bf16.mxu1 %v846_v10  ;;  %v847_v15 = vpack.c.bf16 %v692_v7, %v691_v4  ;;  %v5595_v7 = vld [vmem:[%s6735_s3 + $0x88] sm:$0xff]   ;;  %v5600_v4 = vld [vmem:[%s6735_s3 + $0xb0] sm:$0xff]  }
 0x143   :  { %v657_v0 = vmax.f32 %v589_v11, 0.0  ;;  %v592_v18 = vadd.f32 %v4951_v14, %v5916_v43  ;;  %v583_v57 = vpop.f32.mrb[47].mxu0  ;;  %4957 = vmatpush3.bf16.msra.mxu1 %v846_v10  ;;  %v5602_v10 = vld [vmem:[%s6735_s3 + $0xc0] sm:$0xff]   ;;  %v5603_v11 = vld [vmem:[%s6735_s3 + $0xc8] sm:$0xff]   ;;  %v5604_v12 = vld [vmem:[%s6735_s3 + $0xd0] sm:$0xff]  }
 0x144   :  { %v655_v23 = vmax.f32 %v581_v13, 0.0  ;;  %v584_v6 = vadd.f32 %v5916_v43, %v583_v57  ;;  %4958 = vmatprep.subr.bf16.mxu1 %v847_v15  ;;  %v5605_v13 = vld [vmem:[%s6735_s3 + $0xd8] sm:$0xff]   ;;  %v5606_v14 = vld [vmem:[%s6735_s3 + $0xe0] sm:$0xff]  }
 0x145   :  { %v696_v17 = vmax.f32 %v683_v36, %v657_v0  ;;  %v658_v19 = vmax.f32 %v592_v18, 0.0  ;;  %v5608_v0 = vld [vmem:[%s6735_s3 + $0xf0] sm:$0xff]   ;;  %v5609_v18 = vld [vmem:[%s6735_s3 + $0xf8] sm:$0xff]   ;;  %v5610_v57 = vld [vmem:[%s6735_s3 + $0x100] sm:$0xff]  }
 0x146   :  { %v694_v25 = vmax.f32 %v5967_v21, %v655_v23  ;;  %v656_v26 = vmax.f32 %v584_v6, 0.0  ;;  %v6140_v23 = vld [vmem:[%s6737_s5] sm:$0xf]  ;;  %v5611_v6 = vld [vmem:[%s6735_s3 + $0x108] sm:$0xff]  }
 0x147   :  { %v697_v27 = vmax.f32 %v684_v62, %v658_v19  ;;  %4959 = vmatpush3.bf16.msra.mxu1 %v847_v15  ;;  %v5607_v15 = vld [vmem:[%s6735_s3 + $0xe8] sm:$0xff]   ;;  %v5613_v19 = vld [vmem:[%s6735_s3 + $0x118] sm:$0xff]  }
 0x148   :  { %v695_v28 = vmax.f32 %v682_v16, %v656_v26  ;;  %v4954_v29 = vpop.f32.mrb[48].mxu0  ;;  %v848_v30 = vpack.c.bf16 %v694_v25, %v693_v41  ;;  %v5599_v41 = vld [vmem:[%s6735_s3 + $0xa8] sm:$0xff]   ;;  %v5614_v25 = vld [vmem:[%s6735_s3 + $0x120] sm:$0xff]  }
 0x149   :  { %v605_v31 = vadd.f32 %v4954_v29, %v5916_v43  ;;  %v596_v32 = vpop.f32.mrb[49].mxu0  ;;  %v5615_v26 = vld [vmem:[%s6735_s3 + $0x128] sm:$0xff]   ;;  %v5618_v29 = vld [vmem:[%s6735_s3 + $0x140] sm:$0xff]  }
 0x14a   :  { %v597_v24 = vadd.f32 %v5916_v43, %v596_v32  ;;  %v4955_v33 = vpop.f32.mrb[50].mxu0  ;;  %4960 = vmatprep.subr.bf16.mxu1 %v848_v30  ;;  %v849_v34 = vpack.c.bf16 %v696_v17, %v695_v28  ;;  %v5612_v17 = vld [vmem:[%s6735_s3 + $0x110] sm:$0xff]   ;;  %v5617_v28 = vld [vmem:[%s6735_s3 + $0x138] sm:$0xff]  }
 0x14b   :  { %v661_v35 = vmax.f32 %v605_v31, 0.0  ;;  %v608_v36 = vadd.f32 %v4955_v33, %v5916_v43  ;;  %v599_v38 = vpop.f32.mrb[51].mxu0  ;;  %4961 = vmatpush3.bf16.msra.mxu1 %v848_v30  ;;  %v5619_v30 = vld [vmem:[%s6735_s3 + $0x148] sm:$0xff]   ;;  %v5620_v31 = vld [vmem:[%s6735_s3 + $0x150] sm:$0xff]   ;;  %v5621_v32 = vld [vmem:[%s6735_s3 + $0x158] sm:$0xff]  }
 0x14c   :  { %v659_v21 = vmax.f32 %v597_v24, 0.0  ;;  %v600_v62 = vadd.f32 %v5916_v43, %v599_v38  ;;  %4962 = vmatprep.subr.bf16.mxu1 %v849_v34  ;;  %v5622_v24 = vld [vmem:[%s6735_s3 + $0x160] sm:$0xff]   ;;  %v5623_v33 = vld [vmem:[%s6735_s3 + $0x168] sm:$0xff]  }
 0x14d   :  { %v700_v16 = vmax.f32 %v687_v55, %v661_v35  ;;  %v662_v37 = vmax.f32 %v608_v36, 0.0  ;;  %v5584_v55 = vld [vmem:[%s6735_s3 + $0x30] sm:$0xff]   ;;  %v5625_v35 = vld [vmem:[%s6735_s3 + $0x178] sm:$0xff]   ;;  %v5626_v36 = vld [vmem:[%s6735_s3 + $0x180] sm:$0xff]  }
 0x14e   :  { %v698_v42 = vmax.f32 %v5974_v20, %v659_v21  ;;  %v660_v39 = vmax.f32 %v600_v62, 0.0  ;;  %v5579_v20 = vld [vmem:[%s6735_s3 + $0x8] sm:$0xff]   ;;  %v5628_v21 = vld [vmem:[%s6735_s3 + $0x190] sm:$0xff]   ;;  %v5629_v62 = vld [vmem:[%s6735_s3 + $0x198] sm:$0xff]  }
 0x14f   :  { %v701_v45 = vmax.f32 %v5980_v53, %v662_v37  ;;  %4963 = vmatpush3.bf16.msra.mxu1 %v849_v34  ;;  %v5581_v53 = vld [vmem:[%s6735_s3 + $0x18] sm:$0xff]   ;;  %v5624_v34 = vld [vmem:[%s6735_s3 + $0x170] sm:$0xff]   ;;  %v5627_v38 = vld [vmem:[%s6735_s3 + $0x188] sm:$0xff]  }
 0x150   :  { %v699_v47 = vmax.f32 %v5983_v44, %v660_v39  ;;  %v850_v40 = vpack.c.bf16 %v698_v42, %v697_v27  ;;  %v4544_v44 = vld [vmem:[%s6737_s5 + $0x4] sm:$0xf]  ;;  %v5616_v27 = vld [vmem:[%s6735_s3 + $0x130] sm:$0xff]   ;;  %v5631_v37 = vld [vmem:[%s6735_s3 + $0x1a8] sm:$0xff]  }
 0x151   :  { %v852_v52 = vpack.c.bf16 %v701_v45, %v701_v45  ;;  %5532 = vmatprep.subr.msk.bf16.mxu0 %vm1430_vm3, %v4544_v44  ;;  %v2144_v46 = vsel %vm1430_vm3, %v4544_v44, 0  ;;  %v5632_v42 = vld [vmem:[%s6735_s3 + $0x1b0] sm:$0xff]  }
 0x152   :  { %4964 = vmatprep.subr.bf16.mxu1 %v850_v40  ;;  %v851_v51 = vpack.c.bf16 %v700_v16, %v699_v47  ;;  %5115 = vmatpush3.bf16.msra.mxu0 %v2144_v46  ;;  %v5630_v16 = vld [vmem:[%s6735_s3 + $0x1a0] sm:$0xff]   ;;  %v5633_v47 = vld [vmem:[%s6735_s3 + $0x1b8] sm:$0xff]  }
 0x153   :  { %4965 = vmatpush3.bf16.msra.mxu1 %v850_v40  ;;  %v1432_v43 = vsel %vm1430_vm3, %v852_v52, 0  ;;  %5534 = vmatprep.subr.msk.bf16.mxu0 %vm1430_vm3, %v6140_v23 }
 0x154   :  { %4966 = vmatprep.subr.bf16.mxu1 %v851_v51 }
 0x157   :  { %4967 = vmatpush3.bf16.msra.mxu1 %v851_v51  ;;  %v5634_v51 = vld [vmem:[%s6735_s3 + $0x1c0] sm:$0xff]  }
 0x158   :  { %5531 = vmatprep.subr.msk.bf16.mxu1 %vm1430_vm3, %v852_v52 }
 0x15b   :  { %4969 = vmatpush3.bf16.msra.mxu1 %v1432_v43 }
 0x15c   :  { %5533 = vmatprep.subr.msk.bf16.mxu1 %vm1430_vm3, %v4544_v44 }
 0x15e   :  { %4971 = vmatmul.mubr.msk.bf16.vlgmr.msra.gmra.mrb[0].mxu1 %vm1213_vm2, %v5579_v20 }
 0x15f   :  { %4974 = vmatprep.mubr.msk.bf16.mxu1 %vm1213_vm2, %v5580_v50  ;;  %5389 = vmatpush3.bf16.msra.mxu1 %v2144_v46  ;;  %v5636_v46 = vld [vmem:[%s6735_s3 + $0x1d0] sm:$0xff]  }
 0x166   :  { %4975 = vmatmul.mubr.msk.bf16.gmra.mrb[4].mxu1 %vm1213_vm2, %v5581_v53 }
 0x167   :  { %4978 = vmatprep.mubr.msk.bf16.mxu1 %vm1213_vm2, %v5582_v22  ;;  %v5635_v22 = vld [vmem:[%s6735_s3 + $0x1c8] sm:$0xff]  }
 0x16e   :  { %4979 = vmatmul.mubr.msk.bf16.gmra.mrb[8].mxu1 %vm1213_vm2, %v5583_v54 }
 0x16f   :  { %4982 = vmatprep.mubr.msk.bf16.mxu1 %vm1213_vm2, %v5584_v55 }
 0x176   :  { %4983 = vmatmul.mubr.msk.bf16.gmra.mrb[12].mxu1 %vm1213_vm2, %v5585_v56 }
 0x177   :  { %4986 = vmatprep.mubr.msk.bf16.mxu1 %vm1213_vm2, %v5586_v58 }
 0x17e   :  { %4987 = vmatmul.mubr.msk.bf16.gmra.mrb[16].mxu1 %vm1213_vm2, %v5587_v59 }
 0x17f   :  { %4990 = vmatprep.mubr.msk.bf16.mxu1 %vm1213_vm2, %v5588_v60  ;;  %v5637_v60 = vld [vmem:[%s6735_s3 + $0x1d8] sm:$0xff]  }
 0x186   :  { %4991 = vmatmul.mubr.msk.bf16.gmra.mrb[20].mxu1 %vm1213_vm2, %v5589_v61 }
 0x187   :  { %4994 = vmatprep.mubr.msk.bf16.mxu1 %vm1213_vm2, %v5590_v63  ;;  %v5638_v63 = vld [vmem:[%s6735_s3 + $0x1e0] sm:$0xff]  }
 0x18e   :  { %4995 = vmatmul.mubr.msk.bf16.gmra.mrb[24].mxu1 %vm1213_vm2, %v5591_v1 }
 0x18f   :  { %4998 = vmatprep.mubr.msk.bf16.mxu1 %vm1213_vm2, %v5592_v2 }
 0x196   :  { %4999 = vmatmul.mubr.msk.bf16.gmra.mrb[28].mxu1 %vm1213_vm2, %v5593_v3 }
 0x197   :  { %5002 = vmatprep.mubr.msk.bf16.mxu1 %vm1213_vm2, %v5594_v5 }
 0x19e   :  { %5003 = vmatmul.mubr.msk.bf16.gmra.mrb[32].mxu1 %vm1213_vm2, %v5595_v7 }
 0x19f   :  { %5006 = vmatprep.mubr.msk.bf16.mxu1 %vm1213_vm2, %v5596_v49  ;;  %v5639_v49 = vld [vmem:[%s6735_s3 + $0x1e8] sm:$0xff]  }
 0x1a6   :  { %5007 = vmatmul.mubr.msk.bf16.gmra.mrb[36].mxu1 %vm1213_vm2, %v5597_v48 }
 0x1a7   :  { %5010 = vmatprep.mubr.msk.bf16.mxu1 %vm1213_vm2, %v5598_v8  ;;  %v5640_v8 = vld [vmem:[%s6735_s3 + $0x1f0] sm:$0xff]  }
 0x1ae   :  { %5011 = vmatmul.mubr.msk.bf16.gmra.mrb[40].mxu1 %vm1213_vm2, %v5599_v41 }
 0x1af   :  { %5014 = vmatprep.mubr.msk.bf16.mxu1 %vm1213_vm2, %v5600_v4 }
 0x1b6   :  { %5015 = vmatmul.mubr.msk.bf16.gmra.mrb[44].mxu1 %vm1213_vm2, %v5601_v9 }
 0x1b7   :  { %5018 = vmatprep.mubr.msk.bf16.mxu1 %vm1213_vm2, %v5602_v10 }
 0x1be   :  { %5019 = vmatmul.mubr.msk.bf16.gmra.mrb[48].mxu1 %vm1213_vm2, %v5603_v11 }
 0x1bf   :  { %5022 = vmatprep.mubr.msk.bf16.mxu1 %vm1213_vm2, %v5604_v12  ;;  %v5641_v12 = vld [vmem:[%s6735_s3 + $0x1f8] sm:$0xff]  }
 0x1c6   :  { %5023 = vmatmul.mubr.msk.bf16.gmra.mrb[52].mxu1 %vm1213_vm2, %v5605_v13 }
 0x1c7   :  { %5026 = vmatprep.mubr.msk.bf16.mxu1 %vm1213_vm2, %v5606_v14  ;;  %v5642_v14 = vld [vmem:[%s6735_s3 + $0x200] sm:$0xff]  }
 0x1ce   :  { %5027 = vmatmul.mubr.msk.bf16.gmra.mrb[56].mxu1 %vm1213_vm2, %v5607_v15 }
 0x1cf   :  { %5030 = vmatprep.mubr.msk.bf16.mxu1 %vm1213_vm2, %v5608_v0 }
 0x1d6   :  { %5031 = vmatmul.mubr.msk.bf16.gmra.mrb[60].mxu1 %vm1213_vm2, %v5609_v18 }
 0x1d7   :  { %5034 = vmatprep.mubr.msk.bf16.mxu1 %vm1213_vm2, %v5610_v57  ;;  %v2268_v57 = vsel %vm1430_vm3, %v6140_v23, 0 }
 0x1de   :  { %5035 = vmatmul.mubr.msk.bf16.gmra.mrb[64].mxu1 %vm1213_vm2, %v5611_v6  ;;  %v4561_v6 = vld [vmem:[%s6737_s5 + $0x8] sm:$0xf] }
 0x1df   :  { %5038 = vmatprep.mubr.msk.bf16.mxu1 %vm1213_vm2, %v5612_v17 }
 0x1e6   :  { %5039 = vmatmul.mubr.msk.bf16.gmra.mrb[68].mxu1 %vm1213_vm2, %v5613_v19 }
 0x1e7   :  { %5042 = vmatprep.mubr.msk.bf16.mxu1 %vm1213_vm2, %v5614_v25  ;;  %v5643_v25 = vld [vmem:[%s6735_s3 + $0x208] sm:$0xff]  }
 0x1ee   :  { %5043 = vmatmul.mubr.msk.bf16.gmra.mrb[72].mxu1 %vm1213_vm2, %v5615_v26  ;;  %v5644_v26 = vld [vmem:[%s6735_s3 + $0x210] sm:$0xff]  }
 0x1ef   :  { %5046 = vmatprep.mubr.msk.bf16.mxu1 %vm1213_vm2, %v5616_v27 }
 0x1f6   :  { %5047 = vmatmul.mubr.msk.bf16.gmra.mrb[76].mxu1 %vm1213_vm2, %v5617_v28 }
 0x1f7   :  { %5050 = vmatprep.mubr.msk.bf16.mxu1 %vm1213_vm2, %v5618_v29 }
 0x1fe   :  { %5051 = vmatmul.mubr.msk.bf16.gmra.mrb[80].mxu1 %vm1213_vm2, %v5619_v30 }
 0x1ff   :  { %5054 = vmatprep.mubr.msk.bf16.mxu1 %vm1213_vm2, %v5620_v31 }
 0x206   :  { %5055 = vmatmul.mubr.msk.bf16.gmra.mrb[84].mxu1 %vm1213_vm2, %v5621_v32  ;;  %v5645_v32 = vld [vmem:[%s6735_s3 + $0x218] sm:$0xff]  }
 0x207   :  { %5058 = vmatprep.mubr.msk.bf16.mxu1 %vm1213_vm2, %v5622_v24 }
 0x20e   :  { %5059 = vmatmul.mubr.msk.bf16.gmra.mrb[88].mxu1 %vm1213_vm2, %v5623_v33  ;;  %v5646_v33 = vld [vmem:[%s6735_s3 + $0x220] sm:$0xff]  }
 0x20f   :  { %5062 = vmatprep.mubr.msk.bf16.mxu1 %vm1213_vm2, %v5624_v34 }
 0x216   :  { %5063 = vmatmul.mubr.msk.bf16.gmra.mrb[92].mxu1 %vm1213_vm2, %v5625_v35 }
 0x217   :  { %5066 = vmatprep.mubr.msk.bf16.mxu1 %vm1213_vm2, %v5626_v36 }
 0x21e   :  { %5067 = vmatmul.mubr.msk.bf16.gmra.mrb[96].mxu1 %vm1213_vm2, %v5627_v38 }
 0x21f   :  { %5070 = vmatprep.mubr.msk.bf16.mxu1 %vm1213_vm2, %v5628_v21  ;;  %v5647_v21 = vld [vmem:[%s6735_s3 + $0x228] sm:$0xff]  }
 0x226   :  { %5071 = vmatmul.mubr.msk.bf16.gmra.mrb[100].mxu1 %vm1213_vm2, %v5629_v62 }
 0x227   :  { %5074 = vmatprep.mubr.msk.bf16.mxu1 %vm1213_vm2, %v5630_v16  ;;  %v5648_v16 = vld [vmem:[%s6735_s3 + $0x230] sm:$0xff]  }
 0x22e   :  { %5075 = vmatmul.mubr.msk.bf16.gmra.mrb[104].mxu1 %vm1213_vm2, %v5631_v37 }
 0x22f   :  { %5078 = vmatprep.mubr.msk.bf16.mxu1 %vm1213_vm2, %v5632_v42 }
 0x231   :  { %v6232_v39 = vpop.f32.mrb[0].mxu1 }
 0x232   :  { %v6234_v45 = vpop.f32.mrb[1].mxu1 }
 0x233   :  { %v6239_v40 = vpop.f32.mrb[2].mxu1 }
 0x234   :  { %v2044_v52 = vpack.c.bf16 %v6239_v40, %v6232_v39  ;;  %v6246_v43 = vpop.f32.mrb[3].mxu1 }
 0x235   :  { %v2043_v20 = vpack.c.bf16 %v6246_v43, %v6234_v45  ;;  %v4570_v45 = vld [vmem:[%s6737_s5 + $0xc] sm:$0xf] }
 0x236   :  { %5079 = vmatmul.mubr.msk.bf16.gmra.mrb[108].mxu1 %vm1213_vm2, %v5633_v47 }
 0x237   :  { %5082 = vmatprep.mubr.msk.bf16.mxu1 %vm1213_vm2, %v5634_v51 }
 0x239   :  { %v6252_v50 = vpop.f32.mrb[4].mxu1 }
 0x23a   :  { %v6254_v53 = vpop.f32.mrb[5].mxu1 }
 0x23b   :  { %v6259_v44 = vpop.f32.mrb[6].mxu1 }
 0x23c   :  { %v2046_v54 = vpack.c.bf16 %v6259_v44, %v6252_v50  ;;  %v6266_v55 = vpop.f32.mrb[7].mxu1 }
 0x23d   :  { %v2045_v56 = vpack.c.bf16 %v6266_v55, %v6254_v53 }
 0x23e   :  { %5083 = vmatmul.mubr.msk.bf16.gmra.mrb[112].mxu1 %vm1213_vm2, %v5635_v22  ;;  %v2394_v22 = vsel %vm1430_vm3, %v4561_v6, 0 }
 0x23f   :  { %5086 = vmatprep.mubr.msk.bf16.mxu1 %vm1213_vm2, %v5636_v46 }
 0x241   :  { %v6272_v58 = vpop.f32.mrb[8].mxu1 }
 0x242   :  { %v6274_v59 = vpop.f32.mrb[9].mxu1 }
 0x243   :  { %v6279_v61 = vpop.f32.mrb[10].mxu1 }
 0x244   :  { %v2048_v1 = vpack.c.bf16 %v6279_v61, %v6272_v58  ;;  %v6286_v2 = vpop.f32.mrb[11].mxu1 }
 0x245   :  { %v2047_v3 = vpack.c.bf16 %v6286_v2, %v6274_v59 }
 0x246   :  { %5087 = vmatmul.mubr.msk.bf16.gmra.mrb[116].mxu1 %vm1213_vm2, %v5637_v60 }
 0x247   :  { %5090 = vmatprep.mubr.msk.bf16.mxu1 %vm1213_vm2, %v5638_v63 }
 0x249   :  { %v6292_v5 = vpop.f32.mrb[12].mxu1 }
 0x24a   :  { %v6294_v7 = vpop.f32.mrb[13].mxu1 }
 0x24b   :  { %v6299_v48 = vpop.f32.mrb[14].mxu1 }
 0x24c   :  { %v2050_v41 = vpack.c.bf16 %v6299_v48, %v6292_v5  ;;  %v6306_v4 = vpop.f32.mrb[15].mxu1 }
 0x24d   :  { %v2049_v9 = vpack.c.bf16 %v6306_v4, %v6294_v7 }
 0x24e   :  { %5091 = vmatmul.mubr.msk.bf16.gmra.mrb[120].mxu1 %vm1213_vm2, %v5639_v49 }
 0x24f   :  { %5094 = vmatprep.mubr.msk.bf16.mxu1 %vm1213_vm2, %v5640_v8 }
 0x251   :  { %v4988_v10 = vpop.f32.mrb[16].mxu1 }
 0x252   :  { %v1532_v11 = vpop.f32.mrb[17].mxu1 }
 0x253   :  { %v4989_v13 = vpop.f32.mrb[18].mxu1 }
 0x254   :  { %v2052_v15 = vpack.c.bf16 %v4989_v13, %v4988_v10  ;;  %v1535_v0 = vpop.f32.mrb[19].mxu1 }
 0x255   :  { %v2051_v18 = vpack.c.bf16 %v1535_v0, %v1532_v11  ;;  %v4579_v11 = vld [vmem:[%s6737_s5 + $0x10] sm:$0xf] }
 0x256   :  { %5095 = vmatmul.mubr.msk.bf16.gmra.mrb[124].mxu1 %vm1213_vm2, %v5641_v12 }
 0x257   :  { %5116 = vmatprep.mubr.msk.bf16.mxu0 %vm2118_vm4, %v2051_v18  ;;  %5098 = vmatprep.mubr.msk.bf16.mxu1 %vm1213_vm2, %v5642_v14 }
 0x258   :  { %5117 = vmatmul.mubr.msk.bf16.vlgmr.msra.gmra.mrb[52].mxu0 %vm2118_vm4, %v2052_v15 }
 0x259   :  { %5133 = vmatpush3.bf16.msra.mxu0 %v2268_v57  ;;  %v4992_v17 = vpop.f32.mrb[20].mxu1 }
 0x25a   :  { %v1548_v19 = vpop.f32.mrb[21].mxu1  ;;  %5535 = vmatprep.subr.msk.bf16.mxu0 %vm1430_vm3, %v4561_v6 }
 0x25b   :  { %v4993_v23 = vpop.f32.mrb[22].mxu1 }
 0x25c   :  { %v2054_v27 = vpack.c.bf16 %v4993_v23, %v4992_v17  ;;  %v1551_v28 = vpop.f32.mrb[23].mxu1 }
 0x25d   :  { %v2053_v29 = vpack.c.bf16 %v1551_v28, %v1548_v19 }
 0x25e   :  { %5099 = vmatmul.mubr.msk.bf16.gmra.mrb[128].mxu1 %vm1213_vm2, %v5643_v25 }
 0x25f   :  { %5120 = vmatprep.mubr.msk.bf16.mxu0 %vm2118_vm4, %v2053_v29  ;;  %5102 = vmatprep.mubr.msk.bf16.mxu1 %vm1213_vm2, %v5644_v26 }
 0x260   :  { %5121 = vmatmul.mubr.msk.bf16.gmra.mrb[56].mxu0 %vm2118_vm4, %v2054_v27 }
 0x261   :  { %v4996_v30 = vpop.f32.mrb[24].mxu1 }
 0x262   :  { %v1564_v31 = vpop.f32.mrb[25].mxu1 }
 0x263   :  { %v4997_v24 = vpop.f32.mrb[26].mxu1 }
 0x264   :  { %v2056_v34 = vpack.c.bf16 %v4997_v24, %v4996_v30  ;;  %v1567_v35 = vpop.f32.mrb[27].mxu1 }
 0x265   :  { %v2055_v36 = vpack.c.bf16 %v1567_v35, %v1564_v31  ;;  %v4588_v35 = vld [vmem:[%s6737_s5 + $0x14] sm:$0xf] }
 0x266   :  { %5103 = vmatmul.mubr.msk.bf16.gmra.mrb[132].mxu1 %vm1213_vm2, %v5645_v32 }
 0x267   :  { %5124 = vmatprep.mubr.msk.bf16.mxu0 %vm2118_vm4, %v2055_v36  ;;  %5106 = vmatprep.mubr.msk.bf16.mxu1 %vm1213_vm2, %v5646_v33 }
 0x268   :  { %5125 = vmatmul.mubr.msk.bf16.gmra.mrb[60].mxu0 %vm2118_vm4, %v2056_v34  ;;  %v2678_v34 = vsel %vm1430_vm3, %v4579_v11, 0 }
 0x269   :  { %5134 = vmatprep.mubr.msk.bf16.mxu0 %vm2118_vm4, %v2043_v20  ;;  %v5000_v38 = vpop.f32.mrb[28].mxu1  ;;  %v5649_v20 = vld [vmem:[%s6735_s3 + $0x238] sm:$0xff]   ;;  %s6739_s3 = sld [smem:[#allocation8_spill]] }
 0x26a   :  { %v1580_v62 = vpop.f32.mrb[29].mxu1 }
 0x26b   :  { %v5001_v37 = vpop.f32.mrb[30].mxu1 }
 0x26c   :  { %v2058_v42 = vpack.c.bf16 %v5001_v37, %v5000_v38  ;;  %v1583_v47 = vpop.f32.mrb[31].mxu1 }
 0x26d   :  { %v2057_v51 = vpack.c.bf16 %v1583_v47, %v1580_v62 }
 0x26e   :  { %5107 = vmatmul.mubr.msk.bf16.gmra.mrb[136].mxu1 %vm1213_vm2, %v5647_v21 }
 0x26f   :  { %5110 = vmatprep.mubr.msk.bf16.mxu1 %vm1213_vm2, %v5648_v16 }
 0x270   :  { %5135 = vmatmul.mubr.msk.bf16.vlgmr.msra.gmra.mrb[52].mxu0 %vm2118_vm4, %v2044_v52 }
 0x271   :  { %5151 = vmatpush3.bf16.msra.mxu0 %v2394_v22  ;;  %5138 = vmatprep.mubr.msk.bf16.mxu0 %vm2118_vm4, %v2045_v56  ;;  %v5004_v43 = vpop.f32.mrb[32].mxu1 }
 0x272   :  { %v1596_v46 = vpop.f32.mrb[33].mxu1  ;;  %5536 = vmatprep.subr.msk.bf16.mxu0 %vm1430_vm3, %v4570_v45 }
 0x273   :  { %v5005_v60 = vpop.f32.mrb[34].mxu1 }
 0x274   :  { %v2060_v63 = vpack.c.bf16 %v5005_v60, %v5004_v43  ;;  %v1599_v49 = vpop.f32.mrb[35].mxu1 }
 0x275   :  { %v2059_v39 = vpack.c.bf16 %v1599_v49, %v1596_v46 }
 0x276   :  { %5111 = vmatmul.mubr.msk.bf16.gmra.mrb[140].mxu1 %vm1213_vm2, %v5649_v20 }
 0x277   :  { %5128 = vmatprep.mubr.msk.bf16.mxu1 %vm2118_vm4, %v2057_v51 }
 0x278   :  { %5139 = vmatmul.mubr.msk.bf16.gmra.mrb[56].mxu0 %vm2118_vm4, %v2046_v54 }
 0x279   :  { %5142 = vmatprep.mubr.msk.bf16.mxu0 %vm2118_vm4, %v2047_v3  ;;  %v5008_v40 = vpop.f32.mrb[36].mxu1 }
 0x27a   :  { %v1612_v52 = vpop.f32.mrb[37].mxu1 }
 0x27b   :  { %v5009_v53 = vpop.f32.mrb[38].mxu1 }
 0x27c   :  { %v2062_v55 = vpack.c.bf16 %v5009_v53, %v5008_v40  ;;  %v1615_v56 = vpop.f32.mrb[39].mxu1 }
 0x27d   :  { %v2061_v8 = vpack.c.bf16 %v1615_v56, %v1612_v52 }
 0x27e   :  { %5129 = vmatmul.mubr.msk.bf16.vlgmr.msra.gmra.mrb[144].mxu1 %vm2118_vm4, %v2058_v42 }
 0x280   :  { %5143 = vmatmul.mubr.msk.bf16.gmra.mrb[60].mxu0 %vm2118_vm4, %v2048_v1 }
 0x281   :  { %5146 = vmatprep.mubr.msk.bf16.mxu0 %vm2118_vm4, %v2049_v9  ;;  %v5012_v50 = vpop.f32.mrb[40].mxu1  ;;  %v2536_v9 = vsel %vm1430_vm3, %v4570_v45, 0 }
 0x282   :  { %v1628_v44 = vpop.f32.mrb[41].mxu1 }
 0x283   :  { %v5013_v54 = vpop.f32.mrb[42].mxu1 }
 0x284   :  { %v2064_v59 = vpack.c.bf16 %v5013_v54, %v5012_v50  ;;  %v1631_v2 = vpop.f32.mrb[43].mxu1  ;;  %v2820_v50 = vsel %vm1430_vm3, %v4588_v35, 0 }
 0x285   :  { %v2063_v3 = vpack.c.bf16 %v1631_v2, %v1628_v44  ;;  %v4597_v44 = vld [vmem:[%s6737_s5 + $0x18] sm:$0xf] }
 0x288   :  { %5147 = vmatmul.mubr.msk.bf16.gmra.mrb[64].mxu0 %vm2118_vm4, %v2050_v41 }
 0x289   :  { %5152 = vmatprep.mubr.msk.bf16.mxu0 %vm2118_vm4, %v2059_v39  ;;  %v5016_v58 = vpop.f32.mrb[44].mxu1 }
 0x28a   :  { %v1644_v61 = vpop.f32.mrb[45].mxu1 }
 0x28b   :  { %v5017_v1 = vpop.f32.mrb[46].mxu1 }
 0x28c   :  { %v2066_v10 = vpack.c.bf16 %v5017_v1, %v5016_v58  ;;  %v1647_v7 = vpop.f32.mrb[47].mxu1 }
 0x28d   :  { %v2065_v4 = vpack.c.bf16 %v1647_v7, %v1644_v61 }
 0x290   :  { %5153 = vmatmul.mubr.msk.bf16.vlgmr.msra.gmra.mrb[52].mxu0 %vm2118_vm4, %v2060_v63 }
 0x291   :  { %5169 = vmatpush3.bf16.msra.mxu0 %v2536_v9  ;;  %5156 = vmatprep.mubr.msk.bf16.mxu0 %vm2118_vm4, %v2061_v8  ;;  %v5020_v5 = vpop.f32.mrb[48].mxu1 }
 0x292   :  { %v1660_v48 = vpop.f32.mrb[49].mxu1  ;;  %5537 = vmatprep.subr.msk.bf16.mxu0 %vm1430_vm3, %v4579_v11 }
 0x293   :  { %v5021_v41 = vpop.f32.mrb[50].mxu1 }
 0x294   :  { %v2068_v12 = vpack.c.bf16 %v5021_v41, %v5020_v5  ;;  %v1663_v13 = vpop.f32.mrb[51].mxu1 }
 0x295   :  { %v2067_v14 = vpack.c.bf16 %v1663_v13, %v1660_v48 }
 0x298   :  { %5157 = vmatmul.mubr.msk.bf16.gmra.mrb[56].mxu0 %vm2118_vm4, %v2062_v55 }
 0x299   :  { %5160 = vmatprep.mubr.msk.bf16.mxu0 %vm2118_vm4, %v2063_v3  ;;  %v5024_v15 = vpop.f32.mrb[52].mxu1 }
 0x29a   :  { %v1676_v0 = vpop.f32.mrb[53].mxu1 }
 0x29b   :  { %v5025_v18 = vpop.f32.mrb[54].mxu1 }
 0x29c   :  { %v2070_v57 = vpack.c.bf16 %v5025_v18, %v5024_v15  ;;  %v1679_v6 = vpop.f32.mrb[55].mxu1 }
 0x29d   :  { %v2069_v17 = vpack.c.bf16 %v1679_v6, %v1676_v0 }
 0x2a0   :  { %5161 = vmatmul.mubr.msk.bf16.gmra.mrb[60].mxu0 %vm2118_vm4, %v2064_v59 }
 0x2a1   :  { %5164 = vmatprep.mubr.msk.bf16.mxu0 %vm2118_vm4, %v2065_v4  ;;  %v5028_v19 = vpop.f32.mrb[56].mxu1 }
 0x2a2   :  { %v1692_v25 = vpop.f32.mrb[57].mxu1 }
 0x2a3   :  { %v5029_v23 = vpop.f32.mrb[58].mxu1 }
 0x2a4   :  { %v2072_v26 = vpack.c.bf16 %v5029_v23, %v5028_v19  ;;  %v1695_v27 = vpop.f32.mrb[59].mxu1  ;;  %v2962_v19 = vsel %vm1430_vm3, %v4597_v44, 0 }
 0x2a5   :  { %v2071_v28 = vpack.c.bf16 %v1695_v27, %v1692_v25  ;;  %v4606_v25 = vld [vmem:[%s6737_s5 + $0x1c] sm:$0xf] }
 0x2a8   :  { %5165 = vmatmul.mubr.msk.bf16.gmra.mrb[64].mxu0 %vm2118_vm4, %v2066_v10 }
 0x2a9   :  { %5170 = vmatprep.mubr.msk.bf16.mxu0 %vm2118_vm4, %v2067_v14  ;;  %v5032_v29 = vpop.f32.mrb[60].mxu1 }
 0x2aa   :  { %v1708_v30 = vpop.f32.mrb[61].mxu1 }
 0x2ab   :  { %v5033_v31 = vpop.f32.mrb[62].mxu1 }
 0x2ac   :  { %v2074_v32 = vpack.c.bf16 %v5033_v31, %v5032_v29  ;;  %v1711_v24 = vpop.f32.mrb[63].mxu1 }
 0x2ad   :  { %v2073_v33 = vpack.c.bf16 %v1711_v24, %v1708_v30 }
 0x2b0   :  { %5171 = vmatmul.mubr.msk.bf16.vlgmr.msra.gmra.mrb[52].mxu0 %vm2118_vm4, %v2068_v12 }
 0x2b1   :  { %5187 = vmatpush3.bf16.msra.mxu0 %v2678_v34  ;;  %5174 = vmatprep.mubr.msk.bf16.mxu0 %vm2118_vm4, %v2069_v17  ;;  %v5036_v36 = vpop.f32.mrb[64].mxu1 }
 0x2b2   :  { %v1724_v38 = vpop.f32.mrb[65].mxu1  ;;  %5538 = vmatprep.subr.msk.bf16.mxu0 %vm1430_vm3, %v4588_v35 }
 0x2b3   :  { %v5037_v21 = vpop.f32.mrb[66].mxu1 }
 0x2b4   :  { %v2076_v62 = vpack.c.bf16 %v5037_v21, %v5036_v36  ;;  %v1727_v16 = vpop.f32.mrb[67].mxu1 }
 0x2b5   :  { %v2075_v37 = vpack.c.bf16 %v1727_v16, %v1724_v38 }
 0x2b8   :  { %5175 = vmatmul.mubr.msk.bf16.gmra.mrb[56].mxu0 %vm2118_vm4, %v2070_v57 }
 0x2b9   :  { %5178 = vmatprep.mubr.msk.bf16.mxu0 %vm2118_vm4, %v2071_v28  ;;  %v5040_v42 = vpop.f32.mrb[68].mxu1 }
 0x2ba   :  { %v1740_v47 = vpop.f32.mrb[69].mxu1 }
 0x2bb   :  { %v5041_v51 = vpop.f32.mrb[70].mxu1 }
 0x2bc   :  { %v2078_v22 = vpack.c.bf16 %v5041_v51, %v5040_v42  ;;  %v1743_v45 = vpop.f32.mrb[71].mxu1 }
 0x2bd   :  { %v2077_v43 = vpack.c.bf16 %v1743_v45, %v1740_v47 }
 0x2c0   :  { %5179 = vmatmul.mubr.msk.bf16.gmra.mrb[60].mxu0 %vm2118_vm4, %v2072_v26 }
 0x2c1   :  { %5182 = vmatprep.mubr.msk.bf16.mxu0 %vm2118_vm4, %v2073_v33  ;;  %v5044_v20 = vpop.f32.mrb[72].mxu1 }
 0x2c2   :  { %v1756_v46 = vpop.f32.mrb[73].mxu1 }
 0x2c3   :  { %v5045_v60 = vpop.f32.mrb[74].mxu1 }
 0x2c4   :  { %v2080_v63 = vpack.c.bf16 %v5045_v60, %v5044_v20  ;;  %v1759_v49 = vpop.f32.mrb[75].mxu1  ;;  %v3104_v20 = vsel %vm1430_vm3, %v4606_v25, 0 }
 0x2c5   :  { %v2079_v39 = vpack.c.bf16 %v1759_v49, %v1756_v46  ;;  %v4615_v46 = vld [vmem:[%s6737_s5 + $0x20] sm:$0xf] }
 0x2c8   :  { %5183 = vmatmul.mubr.msk.bf16.gmra.mrb[64].mxu0 %vm2118_vm4, %v2074_v32 }
 0x2c9   :  { %5188 = vmatprep.mubr.msk.bf16.mxu0 %vm2118_vm4, %v2075_v37  ;;  %v5048_v40 = vpop.f32.mrb[76].mxu1 }
 0x2ca   :  { %v1772_v52 = vpop.f32.mrb[77].mxu1 }
 0x2cb   :  { %v5049_v53 = vpop.f32.mrb[78].mxu1 }
 0x2cc   :  { %v2082_v55 = vpack.c.bf16 %v5049_v53, %v5048_v40  ;;  %v1775_v56 = vpop.f32.mrb[79].mxu1 }
 0x2cd   :  { %v2081_v8 = vpack.c.bf16 %v1775_v56, %v1772_v52 }
 0x2d0   :  { %5189 = vmatmul.mubr.msk.bf16.vlgmr.msra.gmra.mrb[52].mxu0 %vm2118_vm4, %v2076_v62 }
 0x2d1   :  { %5205 = vmatpush3.bf16.msra.mxu0 %v2820_v50  ;;  %5192 = vmatprep.mubr.msk.bf16.mxu0 %vm2118_vm4, %v2077_v43  ;;  %v5052_v54 = vpop.f32.mrb[80].mxu1 }
 0x2d2   :  { %v1788_v59 = vpop.f32.mrb[81].mxu1  ;;  %5539 = vmatprep.subr.msk.bf16.mxu0 %vm1430_vm3, %v4597_v44 }
 0x2d3   :  { %v5053_v2 = vpop.f32.mrb[82].mxu1 }
 0x2d4   :  { %v2084_v3 = vpack.c.bf16 %v5053_v2, %v5052_v54  ;;  %v1791_v58 = vpop.f32.mrb[83].mxu1 }
 0x2d5   :  { %v2083_v61 = vpack.c.bf16 %v1791_v58, %v1788_v59 }
 0x2d8   :  { %5193 = vmatmul.mubr.msk.bf16.gmra.mrb[56].mxu0 %vm2118_vm4, %v2078_v22 }
 0x2d9   :  { %5196 = vmatprep.mubr.msk.bf16.mxu0 %vm2118_vm4, %v2079_v39  ;;  %v5056_v1 = vpop.f32.mrb[84].mxu1 }
 0x2da   :  { %v1804_v10 = vpop.f32.mrb[85].mxu1 }
 0x2db   :  { %v5057_v7 = vpop.f32.mrb[86].mxu1 }
 0x2dc   :  { %v2086_v4 = vpack.c.bf16 %v5057_v7, %v5056_v1  ;;  %v1807_v9 = vpop.f32.mrb[87].mxu1 }
 0x2dd   :  { %v2085_v11 = vpack.c.bf16 %v1807_v9, %v1804_v10 }
 0x2e0   :  { %5197 = vmatmul.mubr.msk.bf16.gmra.mrb[60].mxu0 %vm2118_vm4, %v2080_v63 }
 0x2e1   :  { %5200 = vmatprep.mubr.msk.bf16.mxu0 %vm2118_vm4, %v2081_v8  ;;  %v5060_v5 = vpop.f32.mrb[88].mxu1 }
 0x2e2   :  { %v1820_v48 = vpop.f32.mrb[89].mxu1 }
 0x2e3   :  { %v5061_v41 = vpop.f32.mrb[90].mxu1 }
 0x2e4   :  { %v2088_v12 = vpack.c.bf16 %v5061_v41, %v5060_v5  ;;  %v1823_v13 = vpop.f32.mrb[91].mxu1  ;;  %v3246_v5 = vsel %vm1430_vm3, %v4615_v46, 0 }
 0x2e5   :  { %v2087_v14 = vpack.c.bf16 %v1823_v13, %v1820_v48 }
 0x2e8   :  { %5201 = vmatmul.mubr.msk.bf16.gmra.mrb[64].mxu0 %vm2118_vm4, %v2082_v55 }
 0x2e9   :  { %5206 = vmatprep.mubr.msk.bf16.mxu0 %vm2118_vm4, %v2083_v61  ;;  %v5064_v15 = vpop.f32.mrb[92].mxu1 }
 0x2ea   :  { %v1836_v0 = vpop.f32.mrb[93].mxu1 }
 0x2eb   :  { %v5065_v18 = vpop.f32.mrb[94].mxu1 }
 0x2ec   :  { %v2090_v57 = vpack.c.bf16 %v5065_v18, %v5064_v15  ;;  %v1839_v6 = vpop.f32.mrb[95].mxu1 }
 0x2ed   :  { %v2089_v17 = vpack.c.bf16 %v1839_v6, %v1836_v0 }
 0x2f0   :  { %5207 = vmatmul.mubr.msk.bf16.vlgmr.msra.gmra.mrb[52].mxu0 %vm2118_vm4, %v2084_v3 }
 0x2f1   :  { %5223 = vmatpush3.bf16.msra.mxu0 %v2962_v19  ;;  %5210 = vmatprep.mubr.msk.bf16.mxu0 %vm2118_vm4, %v2085_v11  ;;  %v5068_v23 = vpop.f32.mrb[96].mxu1 }
 0x2f2   :  { %v1852_v26 = vpop.f32.mrb[97].mxu1  ;;  %5540 = vmatprep.subr.msk.bf16.mxu0 %vm1430_vm3, %v4606_v25 }
 0x2f3   :  { %v5069_v27 = vpop.f32.mrb[98].mxu1 }
 0x2f4   :  { %v2092_v28 = vpack.c.bf16 %v5069_v27, %v5068_v23  ;;  %v1855_v29 = vpop.f32.mrb[99].mxu1 }
 0x2f5   :  { %v2091_v30 = vpack.c.bf16 %v1855_v29, %v1852_v26 }
 0x2f8   :  { %5211 = vmatmul.mubr.msk.bf16.gmra.mrb[56].mxu0 %vm2118_vm4, %v2086_v4 }
 0x2f9   :  { %5214 = vmatprep.mubr.msk.bf16.mxu0 %vm2118_vm4, %v2087_v14  ;;  %v5072_v31 = vpop.f32.mrb[100].mxu1 }
 0x2fa   :  { %v1868_v32 = vpop.f32.mrb[101].mxu1 }
 0x2fb   :  { %v5073_v24 = vpop.f32.mrb[102].mxu1 }
 0x2fc   :  { %v2094_v33 = vpack.c.bf16 %v5073_v24, %v5072_v31  ;;  %v1871_v34 = vpop.f32.mrb[103].mxu1 }
 0x2fd   :  { %v2093_v35 = vpack.c.bf16 %v1871_v34, %v1868_v32 }
 0x300   :  { %5215 = vmatmul.mubr.msk.bf16.gmra.mrb[60].mxu0 %vm2118_vm4, %v2088_v12 }
 0x301   :  { %5218 = vmatprep.mubr.msk.bf16.mxu0 %vm2118_vm4, %v2089_v17  ;;  %v5076_v36 = vpop.f32.mrb[104].mxu1 }
 0x302   :  { %v1884_v38 = vpop.f32.mrb[105].mxu1 }
 0x303   :  { %v5077_v21 = vpop.f32.mrb[106].mxu1 }
 0x304   :  { %v2096_v62 = vpack.c.bf16 %v5077_v21, %v5076_v36  ;;  %v1887_v16 = vpop.f32.mrb[107].mxu1 }
 0x305   :  { %v2095_v37 = vpack.c.bf16 %v1887_v16, %v1884_v38  ;;  %v5664_v16 = vmov 0.0  }
 0x306   :  { %5276 = vmatprep.subr.bf16.mxu1 %v5664_v16  ;;  %5278 = vmatprep.mubr.msk.bf16.mxu1 %vm5665_vm5, %v5664_v16 }
 0x308   :  { %5219 = vmatmul.mubr.msk.bf16.gmra.mrb[64].mxu0 %vm2118_vm4, %v2090_v57 }
 0x309   :  { %5224 = vmatprep.mubr.msk.bf16.mxu0 %vm2118_vm4, %v2091_v30  ;;  %v5080_v42 = vpop.f32.mrb[108].mxu1 }
 0x30a   :  { %v1900_v47 = vpop.f32.mrb[109].mxu1 }
 0x30b   :  { %v5081_v51 = vpop.f32.mrb[110].mxu1 }
 0x30c   :  { %v2098_v22 = vpack.c.bf16 %v5081_v51, %v5080_v42  ;;  %v1903_v45 = vpop.f32.mrb[111].mxu1 }
 0x30d   :  { %v2097_v43 = vpack.c.bf16 %v1903_v45, %v1900_v47  ;;  %v4624_v45 = vld [vmem:[%s6739_s3] ss:$0 sm:$0xff] }
 0x310   :  { %5225 = vmatmul.mubr.msk.bf16.vlgmr.msra.gmra.mrb[52].mxu0 %vm2118_vm4, %v2092_v28 }
 0x311   :  { %5241 = vmatpush3.bf16.msra.mxu0 %v3104_v20  ;;  %5228 = vmatprep.mubr.msk.bf16.mxu0 %vm2118_vm4, %v2093_v35  ;;  %v5084_v60 = vpop.f32.mrb[112].mxu1 }
 0x312   :  { %v1916_v63 = vpop.f32.mrb[113].mxu1  ;;  %5541 = vmatprep.subr.msk.bf16.mxu0 %vm1430_vm3, %v4615_v46 }
 0x313   :  { %v5085_v49 = vpop.f32.mrb[114].mxu1 }
 0x314   :  { %v2100_v39 = vpack.c.bf16 %v5085_v49, %v5084_v60  ;;  %v1919_v40 = vpop.f32.mrb[115].mxu1 }
 0x315   :  { %v2099_v52 = vpack.c.bf16 %v1919_v40, %v1916_v63 }
 0x318   :  { %5229 = vmatmul.mubr.msk.bf16.gmra.mrb[56].mxu0 %vm2118_vm4, %v2094_v33 }
 0x319   :  { %5232 = vmatprep.mubr.msk.bf16.mxu0 %vm2118_vm4, %v2095_v37  ;;  %v5088_v53 = vpop.f32.mrb[116].mxu1 }
 0x31a   :  { %v1932_v55 = vpop.f32.mrb[117].mxu1 }
 0x31b   :  { %v5089_v56 = vpop.f32.mrb[118].mxu1 }
 0x31c   :  { %v2102_v8 = vpack.c.bf16 %v5089_v56, %v5088_v53  ;;  %v1935_v50 = vpop.f32.mrb[119].mxu1 }
 0x31d   :  { %v2101_v44 = vpack.c.bf16 %v1935_v50, %v1932_v55  ;;  %v5666_v50 = vmov 0  }
 0x31e   :  { %5547 = vset.pattern.permute.xlu0 %v5666_v50  ;;  %5548 = vset.pattern.permute.xlu1 %v5666_v50  ;;  %v4636_v50 = vld [vmem:[%s6741_s0 + $0x8] sm:$0xf] }
 0x320   :  { %5233 = vmatmul.mubr.msk.bf16.gmra.mrb[60].mxu0 %vm2118_vm4, %v2096_v62  ;;  %v4625_v62 = vld [vmem:[%s6738_s4 + $0x4] sm:$0xf] }
 0x321   :  { %5236 = vmatprep.mubr.msk.bf16.mxu0 %vm2118_vm4, %v2097_v43  ;;  %v5092_v54 = vpop.f32.mrb[120].mxu1  ;;  %v3423_v37 = vsel %vm1430_vm3, %v4625_v62, 0 }
 0x322   :  { %v1948_v59 = vpop.f32.mrb[121].mxu1  ;;  %5277 = vmatpush3.bf16.msra.mxu1 %v3423_v37 }
 0x323   :  { %v5093_v2 = vpop.f32.mrb[122].mxu1  ;;  %5282 = vmatprep.subr.bf16.mxu1 %v5664_v16 }
 0x324   :  { %v2104_v3 = vpack.c.bf16 %v5093_v2, %v5092_v54  ;;  %v1951_v58 = vpop.f32.mrb[123].mxu1 }
 0x325   :  { %v2103_v61 = vpack.c.bf16 %v1951_v58, %v1948_v59 }
 0x328   :  { %5237 = vmatmul.mubr.msk.bf16.gmra.mrb[64].mxu0 %vm2118_vm4, %v2098_v22 }
 0x329   :  { %5242 = vmatprep.mubr.msk.bf16.mxu0 %vm2118_vm4, %v2099_v52  ;;  %v5096_v1 = vpop.f32.mrb[124].mxu1 }
 0x32a   :  { %v1964_v10 = vpop.f32.mrb[125].mxu1 }
 0x32b   :  { %v5097_v7 = vpop.f32.mrb[126].mxu1 }
 0x32c   :  { %v2106_v4 = vpack.c.bf16 %v5097_v7, %v5096_v1  ;;  %v1967_v9 = vpop.f32.mrb[127].mxu1 }
 0x32d   :  { %v2105_v11 = vpack.c.bf16 %v1967_v9, %v1964_v10 }
 0x330   :  { %5243 = vmatmul.mubr.msk.bf16.vlgmr.msra.gmra.mrb[52].mxu0 %vm2118_vm4, %v2100_v39 }
 0x331   :  { %5259 = vmatpush3.bf16.msra.mxu0 %v3246_v5  ;;  %5246 = vmatprep.mubr.msk.bf16.mxu0 %vm2118_vm4, %v2101_v44  ;;  %v5100_v48 = vpop.f32.mrb[128].mxu1  ;;  %v4054_v44 = vld [vmem:[%s6740_s28] sm:$0xff] }
 0x332   :  { %v1980_v41 = vpop.f32.mrb[129].mxu1  ;;  %5348 = vmatprep.subr.bf16.mxu0 %v5664_v16  ;;  %4057 = vperm.xlu0 %5547, %v4054_v44   ;;  %v3709_v44 = vsel %vm1430_vm3, %v4636_v50, 0 }
 0x333   :  { %v5101_v12 = vpop.f32.mrb[130].mxu1 }
 0x334   :  { %v2108_v13 = vpack.c.bf16 %v5101_v12, %v5100_v48  ;;  %v1983_v14 = vpop.f32.mrb[131].mxu1 }
 0x335   :  { %v2107_v15 = vpack.c.bf16 %v1983_v14, %v1980_v41 }
 0x338   :  { %5247 = vmatmul.mubr.msk.bf16.gmra.mrb[56].mxu0 %vm2118_vm4, %v2102_v8 }
 0x339   :  { %5250 = vmatprep.mubr.msk.bf16.mxu0 %vm2118_vm4, %v2103_v61  ;;  %v5104_v0 = vpop.f32.mrb[132].mxu1 }
 0x33a   :  { %v1996_v18 = vpop.f32.mrb[133].mxu1 }
 0x33b   :  { %v5105_v57 = vpop.f32.mrb[134].mxu1 }
 0x33c   :  { %v2110_v6 = vpack.c.bf16 %v5105_v57, %v5104_v0  ;;  %v1999_v17 = vpop.f32.mrb[135].mxu1 }
 0x33d   :  { %v2109_v19 = vpack.c.bf16 %v1999_v17, %v1996_v18 }
 0x340   :  { %5251 = vmatmul.mubr.msk.bf16.gmra.mrb[60].mxu0 %vm2118_vm4, %v2104_v3 }
 0x341   :  { %5254 = vmatprep.mubr.msk.bf16.mxu0 %vm2118_vm4, %v2105_v11  ;;  %v5108_v25 = vpop.f32.mrb[136].mxu1 }
 0x342   :  { %v2012_v23 = vpop.f32.mrb[137].mxu1 }
 0x343   :  { %v5109_v26 = vpop.f32.mrb[138].mxu1 }
 0x344   :  { %v2112_v27 = vpack.c.bf16 %v5109_v26, %v5108_v25  ;;  %v2015_v28 = vpop.f32.mrb[139].mxu1 }
 0x345   :  { %v2111_v29 = vpack.c.bf16 %v2015_v28, %v2012_v23 }
 0x348   :  { %5255 = vmatmul.mubr.msk.bf16.gmra.mrb[64].mxu0 %vm2118_vm4, %v2106_v4 }
 0x349   :  { %5260 = vmatprep.mubr.msk.bf16.mxu0 %vm2118_vm4, %v2107_v15  ;;  %v5112_v30 = vpop.f32.mrb[140].mxu1 }
 0x34a   :  { %v2028_v31 = vpop.f32.mrb[141].mxu1 }
 0x34b   :  { %v5113_v32 = vpop.f32.mrb[142].mxu1 }
 0x34c   :  { %v2114_v24 = vpack.c.bf16 %v5113_v32, %v5112_v30  ;;  %v2031_v33 = vpop.f32.mrb[143].mxu1 }
 0x34d   :  { %v2113_v34 = vpack.c.bf16 %v2031_v33, %v2028_v31 }
 0x350   :  { %5261 = vmatmul.mubr.msk.bf16.vlgmr.msra.gmra.mrb[52].mxu0 %vm2118_vm4, %v2108_v13 }
 0x351   :  { %v6475_v35 = vpop.f32.mrb[144].mxu1  ;;  %5264 = vmatprep.mubr.msk.bf16.mxu0 %vm2118_vm4, %v2109_v19 }
 0x352   :  { %v6478_v36 = vpop.f32.mrb[145].mxu1 }
 0x353   :  { %v6480_v38 = vpop.f32.mrb[146].mxu1 }
 0x354   :  { %v6482_v21 = vpop.f32.mrb[147].mxu1 }
 0x358   :  { %5265 = vmatmul.mubr.msk.bf16.gmra.mrb[56].mxu0 %vm2118_vm4, %v2110_v6 }
 0x359   :  { %5268 = vmatprep.mubr.msk.bf16.mxu0 %vm2118_vm4, %v2111_v29 }
 0x360   :  { %5269 = vmatmul.mubr.msk.bf16.gmra.mrb[60].mxu0 %vm2118_vm4, %v2112_v27 }
 0x361   :  { %5272 = vmatprep.mubr.msk.bf16.mxu0 %vm2118_vm4, %v2113_v34 }
 0x368   :  { %5273 = vmatmul.mubr.msk.bf16.gmra.mrb[64].mxu0 %vm2118_vm4, %v2114_v24 }
 0x369   :  { %5352 = vmatprep.mubr.msk.bf16.mxu0 %vm5665_vm5, %v5664_v16 }
 0x423   :  { %v5262_v42 = vpop.f32.mrb[52].mxu0 }
 0x424   :  { %v3282_v47 = vpop.f32.mrb[53].mxu0  ;;  %v3370_v43 = vadd.f32 %v5262_v42, %v4624_v45 }
 0x425   :  { %v5263_v51 = vpop.f32.mrb[54].mxu0  ;;  %v3368_v20 = vadd.f32 %v4624_v45, %v3282_v47 }
 0x426   :  { %v3285_v22 = vpop.f32.mrb[55].mxu0  ;;  %v3371_v60 = vadd.f32 %v5263_v51, %v4624_v45  ;;  %v3386_v53 = vmax.f32 %v3370_v43, 0.0 }
 0x427   :  { %v3369_v39 = vadd.f32 %v4624_v45, %v3285_v22  ;;  %v3384_v54 = vmax.f32 %v3368_v20, 0.0 }
 0x428   :  { %v3387_v3 = vmax.f32 %v3371_v60, 0.0 }
 0x429   :  { %v3385_v1 = vmax.f32 %v3369_v39, 0.0 }
 0x42b   :  { %v5266_v46 = vpop.f32.mrb[56].mxu0 }
 0x42c   :  { %v3374_v63 = vadd.f32 %v5266_v46, %v4624_v45  ;;  %v3298_v49 = vpop.f32.mrb[57].mxu0 }
 0x42d   :  { %v3372_v40 = vadd.f32 %v4624_v45, %v3298_v49  ;;  %v5267_v52 = vpop.f32.mrb[58].mxu0  ;;  %v4630_v49 = vld [vmem:[%s6738_s4 + $0xc] sm:$0xf] }
 0x42e   :  { %v3390_v55 = vmax.f32 %v3374_v63, 0.0  ;;  %v3375_v56 = vadd.f32 %v5267_v52, %v4624_v45  ;;  %v3301_v8 = vpop.f32.mrb[59].mxu0  ;;  %v4633_v52 = vld [vmem:[%s6741_s0 + $0x4] sm:$0xf] }
 0x42f   :  { %v3388_v59 = vmax.f32 %v3372_v40, 0.0  ;;  %v3373_v2 = vadd.f32 %v4624_v45, %v3301_v8  ;;  %v3566_v40 = vsel %vm1430_vm3, %v4630_v49, 0 }
 0x430   :  { %v3402_v58 = vmax.f32 %v3386_v53, %v3390_v55  ;;  %v3391_v61 = vmax.f32 %v3375_v56, 0.0  ;;  %v3621_v55 = vsel %vm1430_vm3, %v4633_v52, 0  ;;  %v3617_v56 = vld [vmem:[%s6741_s0] sm:$0xf] }
 0x431   :  { %v3400_v10 = vmax.f32 %v3384_v54, %v3388_v59  ;;  %v3389_v7 = vmax.f32 %v3373_v2, 0.0  ;;  %v3664_v8 = vsel %vm1430_vm3, %v3617_v56, 0  ;;  %v4638_v54 = vld [vmem:[%s6741_s0 + $0xc] sm:$0xf]  ;;  %v4641_v2 = vld [vmem:[%s6702_s8 + $0x4] sm:$0xf] }
 0x432   :  { %v3403_v4 = vmax.f32 %v3387_v3, %v3391_v61  ;;  %v3755_v59 = vsel %vm1430_vm3, %v4638_v54, 0  ;;  %v3810_v3 = vsel %vm1430_vm3, %v4641_v2, 0  ;;  %v4632_v52 = vld [vmem:[%s6707_s9] ss:$0 sm:$0xff] }
 0x433   :  { %v3401_v9 = vmax.f32 %v3385_v1, %v3389_v7  ;;  %v5270_v11 = vpop.f32.mrb[60].mxu0  ;;  %v4644_v1 = vld [vmem:[%s6702_s8 + $0x8] sm:$0xf]  ;;  %v4646_v7 = vld [vmem:[%s6702_s8 + $0xc] sm:$0xf] }
 0x434   :  { %v3378_v5 = vadd.f32 %v5270_v11, %v4624_v45  ;;  %v3314_v48 = vpop.f32.mrb[61].mxu0  ;;  %v5651_v11 = vld [vmem:[%s6703_s15 + $0x8] sm:$0xff]  }
 0x435   :  { %v3376_v41 = vadd.f32 %v4624_v45, %v3314_v48  ;;  %v5271_v12 = vpop.f32.mrb[62].mxu0  ;;  %v4069_v48 = vld [vmem:[%s6705_s13] sm:$0xff] }
 0x436   :  { %v3394_v13 = vmax.f32 %v3378_v5, 0.0  ;;  %v3379_v14 = vadd.f32 %v5271_v12, %v4624_v45  ;;  %v3317_v15 = vpop.f32.mrb[63].mxu0  ;;  %v4061_v5 = vld [vmem:[%s6704_s12] sm:$0xff]  ;;  %4073 = vperm.xlu1 %5548, %v4069_v48  }
 0x437   :  { %v3392_v0 = vmax.f32 %v3376_v41, 0.0  ;;  %v3377_v18 = vadd.f32 %v4624_v45, %v3317_v15  ;;  %4064 = vperm.xlu0 %5547, %v4061_v5  }
 0x438   :  { %v3406_v57 = vmax.f32 %v3402_v58, %v3394_v13  ;;  %v3395_v6 = vmax.f32 %v3379_v14, 0.0  ;;  %v3806_v58 = vld [vmem:[%s6702_s8] sm:$0xf] }
 0x439   :  { %v3404_v17 = vmax.f32 %v3400_v10, %v3392_v0  ;;  %v3393_v19 = vmax.f32 %v3377_v18, 0.0  ;;  %v3853_v61 = vsel %vm1430_vm3, %v3806_v58, 0  ;;  %v3898_v10 = vsel %vm1430_vm3, %v4644_v1, 0  ;;  %v5652_v58 = vld [vmem:[%s6709_s18] sm:$0xff]  }
 0x43a   :  { %v3407_v25 = vmax.f32 %v3403_v4, %v3395_v6  ;;  %v3944_v4 = vsel %vm1430_vm3, %v4646_v7, 0  ;;  %v5654_v1 = vld [vmem:[%s6710_s20] sm:$0xff]  }
 0x43b   :  { %v3405_v23 = vmax.f32 %v3401_v9, %v3393_v19  ;;  %v5274_v26 = vpop.f32.mrb[64].mxu0  ;;  %v5650_v9 = vld [vmem:[%s6703_s15] sm:$0xff]  }
 0x43c   :  { %v5390_v27 = vadd.f32 %v5274_v26, %v6475_v35  ;;  %v3330_v28 = vpop.f32.mrb[65].mxu0  ;;  %5349 = vmatpush3.bf16.msra.mxu0 %v5650_v9  ;;  %v4651_v7 = vld [vmem:[%s6711_s16] ss:$0 sm:$0xff] }
 0x43d   :  { %v5391_v29 = vadd.f32 %v3330_v28, %v6478_v36  ;;  %v5275_v30 = vpop.f32.mrb[66].mxu0  ;;  %v3416_v36 = vld [vmem:[%s6738_s4] sm:$0xf]  ;;  %5350 = vmatprep.subr.bf16.mxu0 %v5664_v16 }
 0x43e   :  { %v3382_v31 = vadd.f32 %v5390_v27, %v4624_v45  ;;  %v5392_v32 = vadd.f32 %v5275_v30, %v6480_v38  ;;  %v3333_v24 = vpop.f32.mrb[67].mxu0  ;;  %v3469_v38 = vsel %vm1430_vm3, %v3416_v36, 0 }
 0x43f   :  { %v3380_v33 = vadd.f32 %v5391_v29, %v4624_v45  ;;  %v5393_v34 = vadd.f32 %v3333_v24, %v6482_v21  ;;  %v4628_v21 = vld [vmem:[%s6738_s4 + $0x8] sm:$0xf] }
 0x440   :  { %v3398_v62 = vmax.f32 %v3382_v31, 0.0  ;;  %v3383_v37 = vadd.f32 %v5392_v32, %v4624_v45  ;;  %v3517_v63 = vsel %vm1430_vm3, %v4628_v21, 0  ;;  %5351 = vmatpush3.bf16.msra.mxu0 %v5651_v11 }
 0x441   :  { %v3396_v42 = vmax.f32 %v3380_v33, 0.0  ;;  %v3381_v47 = vadd.f32 %v5393_v34, %v4624_v45  ;;  %5356 = vmatprep.subr.bf16.mxu0 %v5664_v16 }
 0x442   :  { %v3410_v51 = vmax.f32 %v3406_v57, %v3398_v62  ;;  %v3399_v22 = vmax.f32 %v3383_v37, 0.0 }
 0x443   :  { %v3408_v43 = vmax.f32 %v3404_v17, %v3396_v42  ;;  %v3397_v20 = vmax.f32 %v3381_v47, 0.0 }
 0x444   :  { %v3411_v35 = vmax.f32 %v3407_v25, %v3399_v22  ;;  %v3414_v39 = vpack.c.bf16 %v3410_v51, %v3410_v51 }
 0x445   :  { %v3409_v46 = vmax.f32 %v3405_v23, %v3397_v20  ;;  %v3412_v45 = vpack.c.bf16 %v3408_v43, %v3408_v43 }
 0x446   :  { %v3415_v53 = vpack.c.bf16 %v3411_v35, %v3411_v35 }
 0x447   :  { %v3413_v60 = vpack.c.bf16 %v3409_v46, %v3409_v46 }
 0x449   :  { %5279 = vmatmul.mubr.msk.bf16.vlgmr.msra.gmra.mrb[148].mxu1 %vm2118_vm4, %v3413_v60 }
 0x44a   :  { %5283 = vmatpush3.bf16.msra.mxu1 %v3469_v38  ;;  %5284 = vmatprep.mubr.msk.bf16.mxu1 %vm5665_vm5, %v5664_v16 }
 0x44b   :  { %5288 = vmatprep.subr.bf16.mxu1 %v5664_v16 }
 0x451   :  { %5285 = vmatmul.mubr.msk.bf16.vlgmr.msra.gmra.mrb[152].mxu1 %vm2118_vm4, %v3412_v45 }
 0x452   :  { %5289 = vmatpush3.bf16.msra.mxu1 %v3517_v63  ;;  %5290 = vmatprep.mubr.msk.bf16.mxu1 %vm5665_vm5, %v5664_v16 }
 0x453   :  { %5294 = vmatprep.subr.bf16.mxu1 %v5664_v16 }
 0x459   :  { %5291 = vmatmul.mubr.msk.bf16.vlgmr.msra.gmra.mrb[156].mxu1 %vm2118_vm4, %v3414_v39 }
 0x45a   :  { %5295 = vmatpush3.bf16.msra.mxu1 %v3566_v40  ;;  %5296 = vmatprep.mubr.msk.bf16.mxu1 %vm5665_vm5, %v5664_v16 }
 0x45b   :  { %5300 = vmatprep.subr.bf16.mxu1 %v5664_v16 }
 0x461   :  { %5297 = vmatmul.mubr.msk.bf16.vlgmr.msra.gmra.mrb[160].mxu1 %vm2118_vm4, %v3415_v53 }
 0x462   :  { %5301 = vmatpush3.bf16.msra.mxu1 %v3621_v55  ;;  %5302 = vmatprep.mubr.msk.bf16.mxu1 %vm5665_vm5, %v5664_v16 }
 0x463   :  { %5306 = vmatprep.subr.bf16.mxu1 %v5664_v16 }
 0x469   :  { %5303 = vmatmul.mubr.msk.bf16.vlgmr.msra.gmra.mrb[164].mxu1 %vm2118_vm4, %v3413_v60 }
 0x46a   :  { %5307 = vmatpush3.bf16.msra.mxu1 %v3664_v8  ;;  %5308 = vmatprep.mubr.msk.bf16.mxu1 %vm5665_vm5, %v5664_v16 }
 0x46b   :  { %5312 = vmatprep.subr.bf16.mxu1 %v5664_v16 }
 0x471   :  { %5309 = vmatmul.mubr.msk.bf16.vlgmr.msra.gmra.mrb[168].mxu1 %vm2118_vm4, %v3412_v45 }
 0x472   :  { %5313 = vmatpush3.bf16.msra.mxu1 %v3709_v44  ;;  %5314 = vmatprep.mubr.msk.bf16.mxu1 %vm5665_vm5, %v5664_v16 }
 0x473   :  { %5318 = vmatprep.subr.bf16.mxu1 %v5664_v16 }
 0x479   :  { %5315 = vmatmul.mubr.msk.bf16.vlgmr.msra.gmra.mrb[172].mxu1 %vm2118_vm4, %v3414_v39 }
 0x47a   :  { %5319 = vmatpush3.bf16.msra.mxu1 %v3755_v59  ;;  %5320 = vmatprep.mubr.msk.bf16.mxu1 %vm5665_vm5, %v5664_v16 }
 0x47b   :  { %5324 = vmatprep.subr.bf16.mxu1 %v5664_v16 }
 0x481   :  { %5321 = vmatmul.mubr.msk.bf16.vlgmr.msra.gmra.mrb[176].mxu1 %vm2118_vm4, %v3415_v53 }
 0x482   :  { %5325 = vmatpush3.bf16.msra.mxu1 %v3810_v3  ;;  %5326 = vmatprep.mubr.msk.bf16.mxu1 %vm5665_vm5, %v5664_v16 }
 0x483   :  { %5330 = vmatprep.subr.bf16.mxu1 %v5664_v16 }
 0x489   :  { %5327 = vmatmul.mubr.msk.bf16.vlgmr.msra.gmra.mrb[180].mxu1 %vm2118_vm4, %v3413_v60  ;;  %v4640_v60 = vld [vmem:[%s6706_s10] ss:$0 sm:$0xff] }
 0x48a   :  { %5331 = vmatpush3.bf16.msra.mxu1 %v3853_v61  ;;  %5332 = vmatprep.mubr.msk.bf16.mxu1 %vm5665_vm5, %v5664_v16  ;;  %v5653_v61 = vld [vmem:[%s6709_s18 + $0x8] sm:$0xff]  }
 0x48b   :  { %5336 = vmatprep.subr.bf16.mxu1 %v5664_v16 }
 0x495   :  { %5333 = vmatmul.mubr.msk.bf16.vlgmr.msra.gmra.mrb[180].mxu1 %vm2118_vm4, %v3412_v45 }
 0x496   :  { %5337 = vmatpush3.bf16.msra.mxu1 %v3898_v10  ;;  %5338 = vmatprep.mubr.msk.bf16.mxu1 %vm5665_vm5, %v5664_v16  ;;  %v4058_v10 = vpop.permute.xlu0 %4057 }
 0x497   :  { %5342 = vmatprep.subr.bf16.mxu1 %v5664_v16 }
 0x4a1   :  { %5339 = vmatmul.mubr.msk.bf16.vlgmr.msra.gmra.mrb[180].mxu1 %vm2118_vm4, %v3414_v39 }
 0x4a2   :  { %5343 = vmatpush3.bf16.msra.mxu1 %v3944_v4  ;;  %5344 = vmatprep.mubr.msk.bf16.mxu1 %vm5665_vm5, %v5664_v16 }
 0x4a3   :  { %5364 = vmatprep.subr.bf16.mxu1 %v5664_v16 }
 0x4ad   :  { %5345 = vmatmul.mubr.msk.bf16.vlgmr.msra.gmra.mrb[180].mxu1 %vm2118_vm4, %v3415_v53  ;;  %v3990_v53 = vld [vmem:[%s6708_s14] sm:$0xff]  ;;  %s5668_s14 = smov 64  }
 0x4ae   :  { %5368 = vmatprep.mubr.msk.bf16.mxu1 %vm5665_vm5, %v5664_v16  ;;  %5365 = vmatpush3.bf16.msra.mxu1 %v5654_v1 }
 0x4af   :  { %5366 = vmatprep.subr.bf16.mxu1 %v5664_v16 }
 0x4b5   :  { %v4074_v4 = vpop.permute.xlu1 %4073 }
 0x4b6   :  { %v4065_v9 = vpop.permute.xlu0 %4064 }
 0x51c   :  { %v3459_v41 = vpop.f32.mrb[148].mxu1 }
 0x51d   :  { %v5280_v12 = vpop.f32.mrb[149].mxu1 }
 0x51e   :  { %v3462_v13 = vpop.f32.mrb[150].mxu1  ;;  %v4082_v12 = vmul.f32 %v4651_v7, %v4074_v4 }
 0x51f   :  { %v5281_v14 = vpop.f32.mrb[151].mxu1 }
 0x524   :  { %v3505_v15 = vpop.f32.mrb[152].mxu1 }
 0x525   :  { %v3506_v0 = vadd.f32 %v3505_v15, %v3459_v41  ;;  %v5286_v18 = vpop.f32.mrb[153].mxu1 }
 0x526   :  { %v3508_v57 = vpop.f32.mrb[154].mxu1 }
 0x527   :  { %v5287_v6 = vpop.f32.mrb[155].mxu1 }
 0x52c   :  { %v3553_v17 = vpop.f32.mrb[156].mxu1 }
 0x52d   :  { %v3559_v19 = vadd.f32 %v3553_v17, %v3506_v0  ;;  %v5292_v25 = vpop.f32.mrb[157].mxu1  ;;  %v4652_v0 = vld [vmem:[%s6712_s17] ss:$0 sm:$0xff]  ;;  %s5667_s17 = smov 32  }
 0x52e   :  { %v3556_v23 = vpop.f32.mrb[158].mxu1  ;;  %v4653_v25 = vld [vmem:[%s6713_s19] ss:$0 sm:$0xff] }
 0x52f   :  { %v5293_v26 = vpop.f32.mrb[159].mxu1 }
 0x534   :  { %v3602_v27 = vpop.f32.mrb[160].mxu1 }
 0x535   :  { %v3608_v28 = vadd.f32 %v3602_v27, %v3559_v19  ;;  %v5298_v29 = vpop.f32.mrb[161].mxu1  ;;  %v5655_v19 = vld [vmem:[%s6710_s20 + $0x8] sm:$0xff]  }
 0x536   :  { %v3605_v30 = vpop.f32.mrb[162].mxu1  ;;  %5367 = vmatpush3.bf16.msra.mxu1 %v5655_v19 }
 0x537   :  { %v5299_v31 = vpop.f32.mrb[163].mxu1  ;;  %v3616_v56 = vadd.f32 %v4632_v52, %v3608_v28 }
 0x538   :  { %v5656_v31 = vld [vmem:[%s6714_s22] sm:$0xff]  }
 0x53c   :  { %v3657_v32 = vpop.f32.mrb[164].mxu1 }
 0x53d   :  { %v5304_v24 = vpop.f32.mrb[165].mxu1 }
 0x53e   :  { %v3660_v33 = vpop.f32.mrb[166].mxu1  ;;  %v5658_v24 = vld [vmem:[%s6714_s22 + $0x10] sm:$0xff]  }
 0x53f   :  { %v5305_v34 = vpop.f32.mrb[167].mxu1  ;;  %v5659_v33 = vld [vmem:[%s6714_s22 + $0x18] sm:$0xff]  }
 0x540   :  { %v5660_v34 = vld [vmem:[%s6714_s22 + $0x20] sm:$0xff]  }
 0x544   :  { %v3700_v62 = vpop.f32.mrb[168].mxu1 }
 0x545   :  { %v3701_v37 = vadd.f32 %v3700_v62, %v3657_v32  ;;  %v5310_v42 = vpop.f32.mrb[169].mxu1  ;;  %v5657_v32 = vld [vmem:[%s6714_s22 + $0x8] sm:$0xff]  }
 0x546   :  { %v3703_v47 = vpop.f32.mrb[170].mxu1  ;;  %v5661_v62 = vld [vmem:[%s6714_s22 + $0x28] sm:$0xff]  }
 0x547   :  { %v5311_v51 = vpop.f32.mrb[171].mxu1 }
 0x54c   :  { %v3745_v22 = vpop.f32.mrb[172].mxu1 }
 0x54d   :  { %v3751_v43 = vadd.f32 %v3745_v22, %v3701_v37  ;;  %v5316_v20 = vpop.f32.mrb[173].mxu1  ;;  %v4657_v37 = vld [vmem:[%s6715_s21] ss:$0 sm:$0xff] }
 0x54e   :  { %v3748_v35 = vpop.f32.mrb[174].mxu1 }
 0x54f   :  { %v5317_v36 = vpop.f32.mrb[175].mxu1 }
 0x554   :  { %v3791_v46 = vpop.f32.mrb[176].mxu1 }
 0x555   :  { %v3797_v38 = vadd.f32 %v3791_v46, %v3751_v43  ;;  %v5322_v21 = vpop.f32.mrb[177].mxu1 }
 0x556   :  { %v3794_v45 = vpop.f32.mrb[178].mxu1 }
 0x557   :  { %v3805_v63 = vadd.f32 %v4640_v60, %v3797_v38  ;;  %v5323_v49 = vpop.f32.mrb[179].mxu1  ;;  %v4661_v38 = vld [vmem:[%s6716_s23] ss:$0 sm:$0xff] }
 0x559   :  { %v3987_v39 = vmul.f32 0.5, %v3805_v63 }
 0x55b   :  { %v3988_v40 = vmul.f32 1.442695, %v3987_v39 }
 0x55d   :  { %5662 = vpow2.f32 %v3988_v40 }
 0x567   :  { %v5663_v55 = vpop.eup %5662 }
 0x568   :  { %v3991_v8 = vmul.f32 %v5663_v55, %v3990_v53 }
 0x56a   :  { %v6624_v50 = vadd.f32 %v3991_v8, %v3616_v56 }
 0x56c   :  { %v3993_v44 = vpack.c.bf16 %v6624_v50, %v6624_v50 }
 0x56e   :  { %5353 = vmatmul.mubr.msk.bf16.vlgmr.msra.gmra.mrb[68].mxu0 %vm4010_vm6, %v3993_v44 }
 0x56f   :  { %5360 = vmatprep.mubr.msk.bf16.mxu0 %vm5665_vm5, %v5664_v16  ;;  %5357 = vmatpush3.bf16.msra.mxu0 %v5652_v58 }
 0x570   :  { %5358 = vmatprep.subr.bf16.mxu0 %v5664_v16 }
 0x573   :  { %5359 = vmatpush3.bf16.msra.mxu0 %v5653_v61 }
 0x574   :  { %5372 = vmatprep.subr.bf16.mxu0 %v5664_v16 }
 0x580   :  { %v3980_v54 = vpop.f32.mrb[180].mxu1 }
 0x581   :  { %v5346_v59 = vpop.f32.mrb[181].mxu1  ;;  %v4060_v5 = vmul.f32 %v4058_v10, %v3980_v54 }
 0x582   :  { %v3983_v2 = vpop.f32.mrb[182].mxu1 }
 0x583   :  { %v5347_v3 = vpop.f32.mrb[183].mxu1 }
 0x641   :  { %v4048_v11 = vpop.f32.mrb[68].mxu0 }
 0x642   :  { %v4067_v48 = vmul.f32 %v4065_v9, %v4048_v11  ;;  %v5354_v41 = vpop.f32.mrb[69].mxu0 }
 0x643   :  { %v4051_v13 = vpop.f32.mrb[70].mxu0 }
 0x644   :  { %v4068_v14 = vadd.f32 %v4067_v48, %v4060_v5  ;;  %v5355_v15 = vpop.f32.mrb[71].mxu0 }
 0x646   :  { %v4083_v18 = vadd.f32 %v4082_v12, %v4068_v14 }
 0x648   :  { %v4091_v57 = vadd.f32 %v4652_v0, %v4083_v18 }
 0x64a   :  { %v4092_v6 = vmax.f32 %v4091_v57, 0.0 }
 0x64c   :  { %v4093_v17 = vpack.c.bf16 %v4092_v6, %v4092_v6 }
 0x64e   :  { %5361 = vmatmul.mubr.msk.bf16.vlgmr.msra.gmra.mrb[72].mxu0 %vm4010_vm6, %v4093_v17 }
 0x64f   :  { %5384 = vmatprep.mubr.msk.bf16.mxu0 %vm5665_vm5, %v5664_v16  ;;  %5373 = vmatpush3.bf16.msra.mxu0 %v5656_v31 }
 0x650   :  { %5374 = vmatprep.subr.bf16.mxu0 %v5664_v16 }
 0x653   :  { %5375 = vmatpush3.bf16.msra.mxu0 %v5657_v32 }
 0x654   :  { %5376 = vmatprep.subr.bf16.mxu0 %v5664_v16 }
 0x657   :  { %5377 = vmatpush3.bf16.msra.mxu0 %v5658_v24 }
 0x658   :  { %5378 = vmatprep.subr.bf16.mxu0 %v5664_v16 }
 0x65b   :  { %5379 = vmatpush3.bf16.msra.mxu0 %v5659_v33 }
 0x65c   :  { %5380 = vmatprep.subr.bf16.mxu0 %v5664_v16 }
 0x65f   :  { %5381 = vmatpush3.bf16.msra.mxu0 %v5660_v34 }
 0x660   :  { %5382 = vmatprep.subr.bf16.mxu0 %v5664_v16 }
 0x663   :  { %5383 = vmatpush3.bf16.msra.mxu0 %v5661_v62 }
 0x721   :  { %v4154_v23 = vpop.f32.mrb[72].mxu0 }
 0x722   :  { %v4155_v26 = vadd.f32 %v4653_v25, %v4154_v23  ;;  %v5362_v27 = vpop.f32.mrb[73].mxu0 }
 0x723   :  { %v4157_v28 = vpop.f32.mrb[74].mxu0 }
 0x724   :  { %v4160_v29 = vpack.c.bf16 %v4155_v26, %v4155_v26  ;;  %4229 = vrot.lane.b32.xlu1 %v4155_v26, %s5667_s17  ;;  %v5363_v30 = vpop.f32.mrb[75].mxu0 }
 0x726   :  { %5369 = vmatmul.mubr.msk.bf16.vlgmr.msra.gmra.mrb[184].mxu1 %vm4010_vm6, %v4160_v29 }
 0x796   :  { %v4230_v35 = vpop.permute.xlu1 %4229 }
 0x797   :  { %v4236_v16 = vsel %vm4010_vm6, %v6624_v50, %v4230_v35 }
 0x7f9   :  { %v4221_v42 = vpop.f32.mrb[184].mxu1 }
 0x7fa   :  { %v4222_v47 = vadd.f32 %v4657_v37, %v4221_v42  ;;  %v5370_v51 = vpop.f32.mrb[185].mxu1 }
 0x7fb   :  { %v4224_v22 = vpop.f32.mrb[186].mxu1 }
 0x7fc   :  { %v4227_v43 = vmax.f32 %v4222_v47, 0.0  ;;  %v5371_v20 = vpop.f32.mrb[187].mxu1 }
 0x7fe   :  { %4233 = vrot.lane.b32.xlu0 %v4227_v43, %s5668_s14 }
 0x870   :  { %v4234_v36 = vpop.permute.xlu0 %4233 }
 0x871   :  { %v4238_v46 = vsel %vm4237_vm7, %v4236_v16, %v4234_v36 }
 0x872   :  { %v4239_v60 = vpack.c.bf16 %v4238_v46, %v4238_v46 }
 0x874   :  { %5385 = vmatmul.mubr.msk.bf16.vlgmr.msra.gmra.mrb[76].mxu0 %vm4295_vm8, %v4239_v60 }
 0x947   :  { %v4333_v21 = vpop.f32.mrb[76].mxu0 }
 0x948   :  { %v4334_v45 = vadd.f32 %v4661_v38, %v4333_v21  ;;  %v5386_v63 = vpop.f32.mrb[77].mxu0 }
 0x949   :  { %v4336_v49 = vpop.f32.mrb[78].mxu0 }
 0x94a   :  { %4339 = vst [vmem:[%s6717_s24] sm:$0xff] %v4334_v45  ;;  %v5387_v39 = vpop.f32.mrb[79].mxu0 }

</bundles_post_ra>
